<compile_context>
chip_gen: v7x
topology: tpu7x:2x2x1
jax: 0.10.0
libtpu: 0.0.40
codegen_flags: <defaults>
</compile_context>

<pallas_src>
import functools

import jax
import jax.numpy as jnp
from jax.experimental import pallas as pl
from jax.experimental.pallas import tpu as pltpu

NUM_CLASSES = 16
LR = 1e-3
LANE = 128            # lane-dense class axis width
SUBLANE = 8           # batch (sublane) padding granularity
D_TILE_MAX = 2048     # feature-axis tile for the streaming path
NEG_INF = -1e30       # finite sentinel: exp -> 0 exactly, p*logp stays 0 on padding


def _round_up(v, m):
    return (v + m - 1) // m * m


def _vmem_capacity_bytes():
    try:
        return int(pltpu.get_tpu_info().vmem_capacity_bytes)
    except Exception:
        return 64 * 1024 * 1024      # conservative (v7x per-core VMEM)


def _vmem_limit(need_bytes):
    cap = _vmem_capacity_bytes()
    return int(min(max(int(need_bytes) + (8 << 20), 32 << 20), int(cap * 0.7)))


# --------------------------------------------------------------------------
# In-kernel helpers (traced inside the kernels)
# --------------------------------------------------------------------------
def _entropy_grad(logits, batch, num_classes):
    """d(mean_b softmax_entropy)/dlogits, exact for real rows/classes, zero on padding.

    logits: (Bp, Cp) f32 (padded batch rows / classes included).
    """
    bp, cp = logits.shape
    col = jax.lax.broadcasted_iota(jnp.int32, (bp, cp), 1)
    row = jax.lax.broadcasted_iota(jnp.int32, (bp, cp), 0)
    masked = jnp.where(col < num_classes, logits, NEG_INF)        # mask pad classes
    m = jnp.max(masked, axis=1, keepdims=True)
    z = masked - m
    e = jnp.exp(z)
    s = jnp.sum(e, axis=1, keepdims=True)
    p = e * pl.reciprocal(s, approx=True)                         # softmax (EUP)
    logp = z - jnp.log(s)                                         # log_softmax
    ent = -jnp.sum(p * logp, axis=1, keepdims=True)               # (Bp, 1)
    # d(mean_b entropy)/dlogits = -p * (log p + H) / B   (real batch size)
    dl = -(p * (logp + ent)) * (1.0 / batch)
    return jnp.where((row < batch) & (col < num_classes), dl, 0.0)


def _transpose_via_mxu(dl):
    """(Bp, Cp) -> (Cp, Bp) with an identity NT matmul.

    Keeps everything on well-supported MXU paths (no transposes of
    sublane-padded shapes, no transposed-lhs dot_generals)."""
    cp = dl.shape[1]
    r = jax.lax.broadcasted_iota(jnp.int32, (cp, cp), 0)
    c = jax.lax.broadcasted_iota(jnp.int32, (cp, cp), 1)
    eye = jnp.where(r == c, 1.0, 0.0).astype(jnp.float32)
    return jax.lax.dot_general(eye, dl, (((1,), (1,)), ((), ())),
                               preferred_element_type=jnp.float32)


# --------------------------------------------------------------------------
# Kernels
# --------------------------------------------------------------------------
def _tent_resident_kernel(x_ref, wt_ref, b_ref,
                          logits_ref, wt_new_ref, b_new_ref,
                          *, batch, num_classes, lr):
    """Single-pass Tent step with W resident in VMEM (W read once, written once).

    x_ref      : (Bp, D)  bf16   flattened input, features on lanes
    wt_ref     : (Cp, D)  f32    class-major weights (nn.Linear layout)
    b_ref      : (1, Cp)  f32    bias
    logits_ref : (Bp, Cp) f32    pre-update logits (module output)
    wt_new_ref : (Cp, D)  f32    SGD-updated weights (aliased onto wt)
    b_new_ref  : (1, Cp)  f32    SGD-updated bias    (aliased onto b)
    """
    x_bf = x_ref[...]
    wt_bf = wt_ref[...].astype(x_bf.dtype)                        # single bf16 cast of W
    # forward: logits = x @ W^T + b     (NT matmul, f32 accumulation)
    logits = jax.lax.dot_general(x_bf, wt_bf, (((1,), (1,)), ((), ())),
                                 preferred_element_type=jnp.float32)
    logits = logits + b_ref[...]
    logits_ref[...] = logits

    dl = _entropy_grad(logits, batch, num_classes)                # (Bp, Cp)
    b_new_ref[...] = b_ref[...] - lr * jnp.sum(dl, axis=0, keepdims=True)

    # backward: grad_W^T = dl^T @ x     (identity NT matmul + NN matmul)
    dlt = _transpose_via_mxu(dl)                                  # (Cp, Bp)
    gwt = jnp.dot(dlt, x_ref[...].astype(jnp.float32),
                  preferred_element_type=jnp.float32)             # (Cp, D)
    wt_new_ref[...] = wt_ref[...] - lr * gwt


def _tent_fwd_kernel(x_ref, wt_ref, b_ref,
                     logits_ref, dlt_ref, b_new_ref,
                     *, batch, num_classes, lr):
    """Streaming forward + entropy gradient, tiled over the feature axis D."""
    k = pl.program_id(0)
    nk = pl.num_programs(0)
    # TODO(synk): keep a bf16 shadow of W to skip the per-tile cast once the
    # streaming path is DMA-bound on something other than W.
    part = jax.lax.dot_general(x_ref[...], wt_ref[...].astype(x_ref.dtype),
                               (((1,), (1,)), ((), ())),
                               preferred_element_type=jnp.float32)

    @pl.when(k == 0)
    def _():
        logits_ref[...] = part + b_ref[...]

    @pl.when(k != 0)
    def _():
        logits_ref[...] += part

    @pl.when(k == nk - 1)
    def _():
        dl = _entropy_grad(logits_ref[...], batch, num_classes)
        dlt_ref[...] = _transpose_via_mxu(dl)
        b_new_ref[...] = b_ref[...] - lr * jnp.sum(dl, axis=0, keepdims=True)


def _tent_bwd_kernel(dlt_ref, x_ref, wt_ref, wt_new_ref, *, lr):
    """Per-D-tile SGD update: W^T -= lr * (dl^T @ x).  Tiles are independent."""
    gwt = jnp.dot(dlt_ref[...], x_ref[...].astype(jnp.float32),
                  preferred_element_type=jnp.float32)             # (Cp, Dt)
    wt_new_ref[...] = wt_ref[...] - lr * gwt


def _tent_eval_kernel(x_ref, wt_ref, b_ref, logits_ref):
    """Plain tiled forward (if_adapt=False / model.eval() path)."""
    k = pl.program_id(0)
    part = jax.lax.dot_general(x_ref[...], wt_ref[...].astype(x_ref.dtype),
                               (((1,), (1,)), ((), ())),
                               preferred_element_type=jnp.float32)

    @pl.when(k == 0)
    def _():
        logits_ref[...] = part + b_ref[...]

    @pl.when(k != 0)
    def _():
        logits_ref[...] += part


# --------------------------------------------------------------------------
# pallas_call wrappers
# --------------------------------------------------------------------------
@functools.partial(jax.jit, static_argnames=("batch", "num_classes"),
                   donate_argnums=(1, 2))
def tent_adapt_resident(x_pad, wt, b, *, batch, num_classes):
    bp, d_pad = x_pad.shape
    c_pad = wt.shape[0]
    need = (2 * wt.size * 4 + wt.size * (4 + 2)      # Wt in/out + gwt + bf16 cast
            + 2 * x_pad.size * 2 + (2 << 20))
    cost = pl.CostEstimate(
        flops=int(4 * bp * d_pad * c_pad + 2 * c_pad * c_pad * bp),
        transcendentals=int(3 * bp * c_pad),
        bytes_accessed=int(x_pad.size * 2 + 2 * wt.size * 4
                           + 2 * b.size * 4 + bp * c_pad * 4),
    )
    kernel = functools.partial(_tent_resident_kernel, batch=batch,
                               num_classes=num_classes, lr=LR)
    return pl.pallas_call(
        kernel,
        out_shape=(
            jax.ShapeDtypeStruct((bp, c_pad), jnp.float32),      # pre-update logits
            jax.ShapeDtypeStruct((c_pad, d_pad), jnp.float32),   # updated W^T
            jax.ShapeDtypeStruct((1, c_pad), jnp.float32),       # updated b
        ),
        grid_spec=pltpu.PrefetchScalarGridSpec(
            num_scalar_prefetch=0,
            grid=(1,),
            in_specs=[
                pl.BlockSpec((bp, d_pad), lambda i: (0, 0)),      # x
                pl.BlockSpec((c_pad, d_pad), lambda i: (0, 0)),   # W^T
                pl.BlockSpec((1, c_pad), lambda i: (0, 0)),       # b
            ],
            out_specs=(
                pl.BlockSpec((bp, c_pad), lambda i: (0, 0)),      # logits
                pl.BlockSpec((c_pad, d_pad), lambda i: (0, 0)),   # W^T new
                pl.BlockSpec((1, c_pad), lambda i: (0, 0)),       # b new
            ),
        ),
        input_output_aliases={1: 1, 2: 2},                        # W->W_new, b->b_new
        compiler_params=pltpu.CompilerParams(
            dimension_semantics=("arbitrary",),
            vmem_limit_bytes=_vmem_limit(need),
        ),
        cost_estimate=cost,
    )(x_pad, wt, b)


@functools.partial(jax.jit,
                   static_argnames=("batch", "num_classes", "d_tile"),
                   donate_argnums=(1, 2))
def tent_adapt_streaming(x_pad, wt, b, *, batch, num_classes, d_tile):
    """Two-call streaming step for W too large to keep resident in VMEM."""
    bp, d_pad = x_pad.shape
    c_pad = wt.shape[0]
    nk = d_pad // d_tile
    tile_need = (2 * (bp * d_tile * 2 + 2 * c_pad * d_tile * 4)
                 + 4 * bp * c_pad * 4 + (2 << 20))

    # ---- call 1: forward + entropy gradient (reduction over D tiles) ----
    fwd_cost = pl.CostEstimate(
        flops=int(2 * bp * d_pad * c_pad + 2 * c_pad * c_pad * bp),
        transcendentals=int(3 * bp * c_pad),
        bytes_accessed=int(x_pad.size * 2 + wt.size * 4 + b.size * 4
                           + 2 * bp * c_pad * 4),
    )
    fwd_kernel = functools.partial(_tent_fwd_kernel, batch=batch,
                                   num_classes=num_classes, lr=LR)
    logits, dlt, b_new = pl.pallas_call(
        fwd_kernel,
        out_shape=(
            jax.ShapeDtypeStruct((bp, c_pad), jnp.float32),       # pre-update logits
            jax.ShapeDtypeStruct((c_pad, bp), jnp.float32),       # dl^T for backward
            jax.ShapeDtypeStruct((1, c_pad), jnp.float32),        # updated bias
        ),
        grid_spec=pltpu.PrefetchScalarGridSpec(
            num_scalar_prefetch=0,
            grid=(nk,),
            in_specs=[
                pl.BlockSpec((bp, d_tile), lambda k: (0, k)),     # x slab
                pl.BlockSpec((c_pad, d_tile), lambda k: (0, k)),  # W^T slab
                pl.BlockSpec((1, c_pad), lambda k: (0, 0)),       # b
            ],
            out_specs=(
                pl.BlockSpec((bp, c_pad), lambda k: (0, 0)),      # logits (resident)
                pl.BlockSpec((c_pad, bp), lambda k: (0, 0)),      # dl^T
                pl.BlockSpec((1, c_pad), lambda k: (0, 0)),       # b new
            ),
        ),
        input_output_aliases={2: 2},                              # b -> b_new
        compiler_params=pltpu.CompilerParams(
            dimension_semantics=("arbitrary",),
            vmem_limit_bytes=_vmem_limit(tile_need),
        ),
        cost_estimate=fwd_cost,
    )(x_pad, wt, b)

    # ---- call 2: per-D-tile W update (independent tiles -> "parallel") ----
    bwd_cost = pl.CostEstimate(
        flops=int(2 * bp * d_pad * c_pad),
        transcendentals=0,
        bytes_accessed=int(bp * c_pad * 4 + x_pad.size * 2 + 2 * wt.size * 4),
    )
    bwd_kernel = functools.partial(_tent_bwd_kernel, lr=LR)
    wt_new = pl.pallas_call(
        bwd_kernel,
        out_shape=jax.ShapeDtypeStruct((c_pad, d_pad), jnp.float32),
        grid_spec=pltpu.PrefetchScalarGridSpec(
            num_scalar_prefetch=0,
            grid=(nk,),
            in_specs=[
                pl.BlockSpec((c_pad, bp), lambda k: (0, 0)),      # dl^T
                pl.BlockSpec((bp, d_tile), lambda k: (0, k)),     # x slab
                pl.BlockSpec((c_pad, d_tile), lambda k: (0, k)),  # W^T slab
            ],
            out_specs=pl.BlockSpec((c_pad, d_tile), lambda k: (0, k)),
        ),
        input_output_aliases={2: 0},                              # W -> W_new
        compiler_params=pltpu.CompilerParams(
            dimension_semantics=("parallel",),                    # megacore on v7x
            vmem_limit_bytes=_vmem_limit(tile_need),
        ),
        cost_estimate=bwd_cost,
    )(dlt, x_pad, wt)

    return logits, wt_new, b_new


@functools.partial(jax.jit, static_argnames=("d_tile",))
def tent_eval(x_pad, wt, b, *, d_tile):
    bp, d_pad = x_pad.shape
    c_pad = wt.shape[0]
    nk = d_pad // d_tile
    tile_need = 2 * (bp * d_tile * 2 + c_pad * d_tile * 4) + bp * c_pad * 4 + (2 << 20)
    cost = pl.CostEstimate(
        flops=int(2 * bp * d_pad * c_pad),
        transcendentals=0,
        bytes_accessed=int(x_pad.size * 2 + wt.size * 4 + b.size * 4
                           + bp * c_pad * 4),
    )
    return pl.pallas_call(
        _tent_eval_kernel,
        out_shape=jax.ShapeDtypeStruct((bp, c_pad), jnp.float32),
        grid_spec=pltpu.PrefetchScalarGridSpec(
            num_scalar_prefetch=0,
            grid=(nk,),
            in_specs=[
                pl.BlockSpec((bp, d_tile), lambda k: (0, k)),
                pl.BlockSpec((c_pad, d_tile), lambda k: (0, k)),
                pl.BlockSpec((1, c_pad), lambda k: (0, 0)),
            ],
            out_specs=pl.BlockSpec((bp, c_pad), lambda k: (0, 0)),
        ),
        compiler_params=pltpu.CompilerParams(
            dimension_semantics=("arbitrary",),
            vmem_limit_bytes=_vmem_limit(tile_need),
        ),
        cost_estimate=cost,
    )(x_pad, wt, b)


# --------------------------------------------------------------------------
# Tent wrapper (steps >= 1, optional episodic reset)
# --------------------------------------------------------------------------
class Tent:
    """JAX/Pallas port of Tent wrapping a linear classifier + SGD."""

    def __init__(self, w, b, steps=1, episodic=False):
        assert steps > 0, "tent requires >= 1 step(s) to forward and update"
        self.steps = steps
        self.episodic = episodic
        self.d, self.num_classes = int(w.shape[0]), int(w.shape[1])

        self.c_pad = _round_up(max(self.num_classes, LANE), LANE)
        d_pad = _round_up(self.d, LANE)

        # resident single-pass if W (+updated copy, bf16 cast, gradient temp)
        # fits comfortably in VMEM; otherwise stream D tiles (two-call path).
        cap = _vmem_capacity_bytes()
        resident_need = self.c_pad * d_pad * (4 + 4 + 4 + 2) + (4 << 20)
        self.resident = resident_need <= int(0.40 * cap)
        if self.resident:
            self.d_tile = d_pad
            self.d_pad = d_pad
        else:
            self.d_tile = min(D_TILE_MAX, d_pad)
            self.d_pad = _round_up(d_pad, self.d_tile)

        # class-major (nn.Linear-style) padded parameters: logits = x @ W^T + b
        self.wt = jnp.zeros((self.c_pad, self.d_pad), jnp.float32).at[
            :self.num_classes, :self.d].set(jnp.asarray(w, jnp.float32).T)
        self.b = jnp.zeros((1, self.c_pad), jnp.float32).at[
            :, :self.num_classes].set(jnp.asarray(b, jnp.float32).reshape(1, -1))

        # copy_model_and_optimizer equivalent: snapshot for reset()
        self._wt0 = jnp.copy(self.wt)
        self._b0 = jnp.copy(self.b)

    def reset(self):
        self.wt = jnp.copy(self._wt0)
        self.b = jnp.copy(self._b0)

    def params(self):
        """Current (unpadded) classifier parameters as (W[D, C], b[1, C])."""
        return (self.wt[:self.num_classes, :self.d].T,
                self.b[:, :self.num_classes])

    def _flatten_pad(self, x):
        batch = x.shape[0]
        b_pad = _round_up(max(batch, SUBLANE), SUBLANE)
        xf = jnp.asarray(x).reshape(batch, -1)          # matches torch .view(B, -1)
        x_pad = jnp.zeros((b_pad, self.d_pad), jnp.bfloat16)
        return x_pad.at[:batch, :self.d].set(xf.astype(jnp.bfloat16))

    def forward(self, x, if_adapt=True):
        if self.episodic:
            self.reset()
        batch = int(x.shape[0])
        x_pad = self._flatten_pad(x)
        if if_adapt:
            outputs = None
            # TODO(synk): for steps > 1, fuse the step loop into a single kernel
            # grid axis so x / W stay resident across steps.
            for _ in range(self.steps):
                if self.resident:
                    outputs, self.wt, self.b = tent_adapt_resident(
                        x_pad, self.wt, self.b,
                        batch=batch, num_classes=self.num_classes)
                else:
                    outputs, self.wt, self.b = tent_adapt_streaming(
                        x_pad, self.wt, self.b, batch=batch,
                        num_classes=self.num_classes, d_tile=self.d_tile)
        else:
            outputs = tent_eval(x_pad, self.wt, self.b, d_tile=self.d_tile)
        return outputs[:batch, :self.num_classes]


# --------------------------------------------------------------------------
if __name__ == "__main__":
    key = jax.random.PRNGKey(0)
    kx, kw, kb = jax.random.split(key, 3)

    B, C_in, H, W_sp = 2, 4, 16, 16                 # NCHW input
    D = C_in * H * W_sp                             # 1024
    C = NUM_CLASSES

    x = jax.random.normal(kx, (B, C_in, H, W_sp), dtype=jnp.float32)
    w = jax.random.normal(kw, (D, C), dtype=jnp.float32) * 0.02
    b = jax.random.normal(kb, (1, C), dtype=jnp.float32) * 0.02

    tent = Tent(w, b, steps=1, episodic=False)

    # ---- pure-JAX reference mirroring the kernel numerics (bf16 MXU operands,
    #      f32 accumulation / epilogue), computed before the in-place update ----
    xf = x.reshape(B, -1)
    x_bf = xf.astype(jnp.bfloat16)
    ref_logits = jnp.dot(x_bf, w.astype(jnp.bfloat16),
                         preferred_element_type=jnp.float32) + b
    p_ref = jax.nn.softmax(ref_logits, axis=1)
    logp_ref = jax.nn.log_softmax(ref_logits, axis=1)
    ent_ref = -(p_ref * logp_ref).sum(1)
    dlog_ref = -(p_ref * (logp_ref + ent_ref[:, None])) / B
    grad_w_ref = x_bf.astype(jnp.float32).T @ dlog_ref
    grad_b_ref = dlog_ref.sum(0, keepdims=True)

    # ---- adapted forward: returns pre-update logits, updates params in place ----
    out = jax.block_until_ready(tent.forward(x, if_adapt=True))
    w_after, b_after = tent.params()

    assert out.shape == (B, C)
    assert bool(jnp.allclose(out, ref_logits, atol=2e-3, rtol=2e-3))

    # verify the entropy-gradient / SGD path via the parameter *updates*
    dw, dw_ref = w_after - w, -LR * grad_w_ref
    db, db_ref = b_after - b, -LR * grad_b_ref
    dw_err = jnp.max(jnp.abs(dw - dw_ref)) / (jnp.max(jnp.abs(dw_ref)) + 1e-30)
    db_err = jnp.max(jnp.abs(db - db_ref)) / (jnp.max(jnp.abs(db_ref)) + 1e-30)
    assert float(dw_err) < 0.1, f"dW mismatch: rel err {float(dw_err)}"
    assert float(db_err) < 0.1, f"db mismatch: rel err {float(db_err)}"

    # ---- eval path (if_adapt=False) uses the updated params, no further update ----
    out_eval = jax.block_until_ready(tent.forward(x, if_adapt=False))
    ref_eval = jnp.dot(x_bf, w_after.astype(jnp.bfloat16),
                       preferred_element_type=jnp.float32) + b_after
    assert bool(jnp.allclose(out_eval, ref_eval, atol=2e-3, rtol=2e-3))

    # ---- exercise the streaming (tiled, two-call) path and check it matches ----
    tent_s = Tent(w, b, steps=1, episodic=False)
    tent_s.resident = False
    tent_s.d_tile = 256                             # force several D tiles
    out_s = jax.block_until_ready(tent_s.forward(x, if_adapt=True))
    w_after_s, b_after_s = tent_s.params()
    assert bool(jnp.allclose(out_s, ref_logits, atol=2e-3, rtol=2e-3))
    assert bool(jnp.allclose(w_after_s, w_after, atol=1e-5, rtol=1e-5))
    assert bool(jnp.allclose(b_after_s, b_after, atol=1e-6, rtol=1e-6))

    # ---- exercise multi-step + episodic paths (shape check only) ----
    tent2 = Tent(w, b, steps=2, episodic=True)
    out2 = jax.block_until_ready(tent2.forward(x, if_adapt=True))
    assert out2.shape == (B, C)

    print("KERNEL_OK")
</pallas_src>

<mosaic_0001>
module attributes {stable_mosaic.version = 11 : i64} {
  func.func @_tent_resident_kernel(%arg0: i32, %arg1: memref<8x1024xbf16, #tpu.memory_space<vmem>>, %arg2: memref<128x1024xf32, #tpu.memory_space<vmem>>, %arg3: memref<1x128xf32, #tpu.memory_space<vmem>>, %arg4: memref<8x128xf32, #tpu.memory_space<vmem>>, %arg5: memref<128x1024xf32, #tpu.memory_space<vmem>>, %arg6: memref<1x128xf32, #tpu.memory_space<vmem>>) attributes {dimension_semantics = [#tpu.dimension_semantics<arbitrary>], iteration_bounds = array<i64: 1>, scalar_prefetch = 0 : i64, scratch_operands = 0 : i64, tpu.core_type = #tpu.core_type<tc>, window_params = [{pipeline_mode = #tpu.pipeline_mode<synchronous>, transform_indices = @transform_0, window_bounds = array<i64: 8, 1024>}, {pipeline_mode = #tpu.pipeline_mode<synchronous>, transform_indices = @transform_1, window_bounds = array<i64: 128, 1024>}, {pipeline_mode = #tpu.pipeline_mode<synchronous>, transform_indices = @transform_2, window_bounds = array<i64: 1, 128>}, {pipeline_mode = #tpu.pipeline_mode<synchronous>, transform_indices = @transform_3, window_bounds = array<i64: 8, 128>}, {pipeline_mode = #tpu.pipeline_mode<synchronous>, transform_indices = @transform_4, window_bounds = array<i64: 128, 1024>}, {pipeline_mode = #tpu.pipeline_mode<synchronous>, transform_indices = @transform_5, window_bounds = array<i64: 1, 128>}]} {
    %c0 = arith.constant 0 : index
    %c0_0 = arith.constant 0 : index
    %0 = vector.load %arg1[%c0, %c0_0] : memref<8x1024xbf16, #tpu.memory_space<vmem>>, vector<8x1024xbf16>
    %c0_1 = arith.constant 0 : index
    %c0_2 = arith.constant 0 : index
    %1 = vector.load %arg2[%c0_1, %c0_2] : memref<128x1024xf32, #tpu.memory_space<vmem>>, vector<128x1024xf32>
    %2 = arith.truncf %1 : vector<128x1024xf32> to vector<128x1024xbf16>
    %cst = arith.constant dense<0.000000e+00> : vector<8x128xf32>
    %3 = tpu.matmul %0, %2, %cst {dimension_numbers = #tpu.dot_dimension_numbers<[1], [1], [0], [0], [0, 0, 1, 0], [], []>} : vector<8x1024xbf16>, vector<128x1024xbf16>, vector<8x128xf32> -> vector<8x128xf32>
    %c0_3 = arith.constant 0 : index
    %c0_4 = arith.constant 0 : index
    %4 = vector.load %arg3[%c0_3, %c0_4] : memref<1x128xf32, #tpu.memory_space<vmem>>, vector<1x128xf32>
    %5 = vector.broadcast %4 : vector<1x128xf32> to vector<8x128xf32>
    %6 = arith.addf %3, %5 : vector<8x128xf32>
    %c0_5 = arith.constant 0 : index
    %c0_6 = arith.constant 0 : index
    %7 = vector.load %arg4[%c0_5, %c0_6] : memref<8x128xf32, #tpu.memory_space<vmem>>, vector<8x128xf32>
    tpu.vector_store %arg4[%c0_5, %c0_6], %6 {strides = array<i32>} : memref<8x128xf32, #tpu.memory_space<vmem>>, vector<8x128xf32>,
    %8 = tpu.iota {dimensions = array<i32: 1>} : vector<8x128xi32>
    %9 = tpu.iota {dimensions = array<i32: 0>} : vector<8x128xi32>
    %c16_i32 = arith.constant 16 : i32
    %10 = vector.broadcast %c16_i32 : i32 to vector<8x128xi32>
    %11 = arith.cmpi slt, %8, %10 : vector<8x128xi32>
    %cst_7 = arith.constant -1.000000e+30 : f32
    %12 = vector.broadcast %cst_7 : f32 to vector<8x128xf32>
    %13 = arith.select %11, %6, %12 : vector<8x128xi1>, vector<8x128xf32>
    %cst_8 = arith.constant dense<0xFF800000> : vector<8xf32>
    %14 = vector.multi_reduction <maximumf>, %13, %cst_8 [1] : vector<8x128xf32> to vector<8xf32>
    %15 = vector.shape_cast %14 : vector<8xf32> to vector<8x1xf32>
    %16 = vector.broadcast %15 : vector<8x1xf32> to vector<8x128xf32>
    %17 = arith.subf %13, %16 : vector<8x128xf32>
    %18 = math.exp %17 : vector<8x128xf32>
    %cst_9 = arith.constant dense<0.000000e+00> : vector<8xf32>
    %19 = vector.multi_reduction <add>, %18, %cst_9 [1] : vector<8x128xf32> to vector<8xf32>
    %20 = vector.shape_cast %19 : vector<8xf32> to vector<8x1xf32>
    %21 = tpu.reciprocal %20 {approx = true} : vector<8x1xf32> -> vector<8x1xf32>
    %22 = vector.broadcast %21 : vector<8x1xf32> to vector<8x128xf32>
    %23 = arith.mulf %18, %22 : vector<8x128xf32>
    %24 = math.log %20 : vector<8x1xf32>
    %25 = vector.broadcast %24 : vector<8x1xf32> to vector<8x128xf32>
    %26 = arith.subf %17, %25 : vector<8x128xf32>
    %27 = arith.mulf %23, %26 : vector<8x128xf32>
    %cst_10 = arith.constant dense<0.000000e+00> : vector<8xf32>
    %28 = vector.multi_reduction <add>, %27, %cst_10 [1] : vector<8x128xf32> to vector<8xf32>
    %29 = vector.shape_cast %28 : vector<8xf32> to vector<8x1xf32>
    %cst_11 = arith.constant 0.000000e+00 : f32
    %30 = vector.broadcast %cst_11 : f32 to vector<8x1xf32>
    %31 = arith.subf %30, %29 : vector<8x1xf32>
    %32 = vector.broadcast %31 : vector<8x1xf32> to vector<8x128xf32>
    %33 = arith.addf %26, %32 : vector<8x128xf32>
    %34 = arith.mulf %23, %33 : vector<8x128xf32>
    %cst_12 = arith.constant 0.000000e+00 : f32
    %35 = vector.broadcast %cst_12 : f32 to vector<8x128xf32>
    %36 = arith.subf %35, %34 : vector<8x128xf32>
    %cst_13 = arith.constant 5.000000e-01 : f32
    %37 = vector.broadcast %cst_13 : f32 to vector<8x128xf32>
    %38 = arith.mulf %36, %37 : vector<8x128xf32>
    %c2_i32 = arith.constant 2 : i32
    %39 = vector.broadcast %c2_i32 : i32 to vector<8x128xi32>
    %40 = arith.cmpi slt, %9, %39 : vector<8x128xi32>
    %c16_i32_14 = arith.constant 16 : i32
    %41 = vector.broadcast %c16_i32_14 : i32 to vector<8x128xi32>
    %42 = arith.cmpi slt, %8, %41 : vector<8x128xi32>
    %43 = arith.andi %40, %42 : vector<8x128xi1>
    %cst_15 = arith.constant 0.000000e+00 : f32
    %44 = vector.broadcast %cst_15 : f32 to vector<8x128xf32>
    %45 = arith.select %43, %38, %44 : vector<8x128xi1>, vector<8x128xf32>
    %c0_16 = arith.constant 0 : index
    %c0_17 = arith.constant 0 : index
    %46 = vector.load %arg3[%c0_16, %c0_17] : memref<1x128xf32, #tpu.memory_space<vmem>>, vector<1x128xf32>
    %cst_18 = arith.constant dense<0.000000e+00> : vector<128xf32>
    %47 = vector.multi_reduction <add>, %45, %cst_18 [0] : vector<8x128xf32> to vector<128xf32>
    %48 = vector.shape_cast %47 : vector<128xf32> to vector<1x128xf32>
    %cst_19 = arith.constant 1.000000e-03 : f32
    %49 = vector.broadcast %cst_19 : f32 to vector<1x128xf32>
    %50 = arith.mulf %49, %48 : vector<1x128xf32>
    %51 = arith.subf %46, %50 : vector<1x128xf32>
    %c0_20 = arith.constant 0 : index
    %c0_21 = arith.constant 0 : index
    %52 = vector.load %arg6[%c0_20, %c0_21] : memref<1x128xf32, #tpu.memory_space<vmem>>, vector<1x128xf32>
    tpu.vector_store %arg6[%c0_20, %c0_21], %51 {strides = array<i32>} : memref<1x128xf32, #tpu.memory_space<vmem>>, vector<1x128xf32>,
    %53 = tpu.iota {dimensions = array<i32: 0>} : vector<128x128xi32>
    %54 = tpu.iota {dimensions = array<i32: 1>} : vector<128x128xi32>
    %55 = arith.cmpi eq, %53, %54 : vector<128x128xi32>
    %cst_22 = arith.constant 1.000000e+00 : f32
    %cst_23 = arith.constant 0.000000e+00 : f32
    %56 = vector.broadcast %cst_22 : f32 to vector<128x128xf32>
    %57 = vector.broadcast %cst_23 : f32 to vector<128x128xf32>
    %58 = arith.select %55, %56, %57 : vector<128x128xi1>, vector<128x128xf32>
    %cst_24 = arith.constant dense<0.000000e+00> : vector<128x8xf32>
    %59 = tpu.matmul %58, %45, %cst_24 {dimension_numbers = #tpu.dot_dimension_numbers<[1], [1], [0], [0], [0, 0, 1, 0], [], []>} : vector<128x128xf32>, vector<8x128xf32>, vector<128x8xf32> -> vector<128x8xf32>
    %c0_25 = arith.constant 0 : index
    %c0_26 = arith.constant 0 : index
    %60 = vector.load %arg1[%c0_25, %c0_26] : memref<8x1024xbf16, #tpu.memory_space<vmem>>, vector<8x1024xbf16>
    %61 = arith.extf %60 : vector<8x1024xbf16> to vector<8x1024xf32>
    %cst_27 = arith.constant dense<0.000000e+00> : vector<128x1024xf32>
    %62 = tpu.matmul %59, %61, %cst_27 {dimension_numbers = #tpu.dot_dimension_numbers<[1], [0], [0], [1], [0, 0, 1, 1], [], []>} : vector<128x8xf32>, vector<8x1024xf32>, vector<128x1024xf32> -> vector<128x1024xf32>
    %c0_28 = arith.constant 0 : index
    %c0_29 = arith.constant 0 : index
    %63 = vector.load %arg2[%c0_28, %c0_29] : memref<128x1024xf32, #tpu.memory_space<vmem>>, vector<128x1024xf32>
    %cst_30 = arith.constant 1.000000e-03 : f32
    %64 = vector.broadcast %cst_30 : f32 to vector<128x1024xf32>
    %65 = arith.mulf %64, %62 : vector<128x1024xf32>
    %66 = arith.subf %63, %65 : vector<128x1024xf32>
    %c0_31 = arith.constant 0 : index
    %c0_32 = arith.constant 0 : index
    %67 = vector.load %arg5[%c0_31, %c0_32] : memref<128x1024xf32, #tpu.memory_space<vmem>>, vector<128x1024xf32>
    tpu.vector_store %arg5[%c0_31, %c0_32], %66 {strides = array<i32>} : memref<128x1024xf32, #tpu.memory_space<vmem>>, vector<128x1024xf32>,
    return
  }
  func.func @transform_0(%arg0: i32) -> (i32, i32) {
    %c0_i32 = arith.constant 0 : i32
    %c0_i32_0 = arith.constant 0 : i32
    %c0_i32_1 = arith.constant 0 : i32
    return %c0_i32, %c0_i32_0 : i32, i32
  }
  func.func @transform_1(%arg0: i32) -> (i32, i32) {
    %c0_i32 = arith.constant 0 : i32
    %c0_i32_0 = arith.constant 0 : i32
    %c0_i32_1 = arith.constant 0 : i32
    return %c0_i32, %c0_i32_0 : i32, i32
  }
  func.func @transform_2(%arg0: i32) -> (i32, i32) {
    %c0_i32 = arith.constant 0 : i32
    %c0_i32_0 = arith.constant 0 : i32
    %c0_i32_1 = arith.constant 0 : i32
    return %c0_i32, %c0_i32_0 : i32, i32
  }
  func.func @transform_3(%arg0: i32) -> (i32, i32) {
    %c0_i32 = arith.constant 0 : i32
    %c0_i32_0 = arith.constant 0 : i32
    %c0_i32_1 = arith.constant 0 : i32
    return %c0_i32, %c0_i32_0 : i32, i32
  }
  func.func @transform_4(%arg0: i32) -> (i32, i32) {
    %c0_i32 = arith.constant 0 : i32
    %c0_i32_0 = arith.constant 0 : i32
    %c0_i32_1 = arith.constant 0 : i32
    return %c0_i32, %c0_i32_0 : i32, i32
  }
  func.func @transform_5(%arg0: i32) -> (i32, i32) {
    %c0_i32 = arith.constant 0 : i32
    %c0_i32_0 = arith.constant 0 : i32
    %c0_i32_1 = arith.constant 0 : i32
    return %c0_i32, %c0_i32_0 : i32, i32
  }
}

</mosaic_0001>

<bundles_post_ra>
// kernel: tent_adapt_resident.1
= control target key start
LH: loop header
LB: loop body
LE: loop exit
PB: predicated region body
PF: predicated region fallthrough
CT: control target
= control target key end

     0   :  { %11 = vsyncpa [#allocation3], 0  ;;  %s2687_s0 = inlined_call_operand.hbm [shape: bf16[8,1024], index: 0, kind: input, shape index: {}]   ;;  %s2688_s1 = inlined_call_operand.hbm [shape: f32[128,1024], index: 1, kind: input, shape index: {}, may-alias: {1,4}]   ;;  %s2689_s2 = inlined_call_operand.hbm [shape: f32[1,128], index: 2, kind: input, shape index: {}, may-alias: {2,5}]   ;;  %s2690_s3 = inlined_call_operand.hbm [shape: f32[8,128], index: 3, kind: output, shape index: {0}]   ;;  %s2691_s4 = inlined_call_operand.hbm [shape: f32[128,1024], index: 4, kind: output, shape index: {1}, may-alias: {1,4}]   ;;  %s2692_s5 = inlined_call_operand.hbm [shape: f32[1,128], index: 5, kind: output, shape index: {2}, may-alias: {2,5}]  }
   0x1   :  { %12 = vsyncpa [#allocation6], 0 }
   0x2   :  { %13 = vsyncpa [#allocation4], 0 }
   0x3   :  { %14 = vsyncpa [#allocation10], 0  ;;  %s2255_s18 = smov [#allocation5]   ;;  %s2115_s22 = scalar_lea.hbm %s2688_s1, 16384 }
   0x4   :  { %s30_s19 = sshll.u32 %s2255_s18, 4  ;;  %p2116_p0 = scmp.ne.s32.totalorder %s2688_s1, %s2115_s22  ;;  %s31_s19 = int_to_ptr.vmem [resolvable:$true] %s30_s19 }
   0x5   :  { %p2119_p1 = scmp.lt.u32.totalorder %s2115_s22, %s2688_s1 }
   0x7   :  { %p2121_p2 = pnand %p2119_p1, %p2116_p0 }
   0x9   :  { %2124 = shalt.err (!%p2121_p2)
}
   0xa   :  { %s2125_s27 = scalar_lea.vmem %s31_s19, 16384  ;;  %p2130_p4 = scmp.lt.s32.totalorder %s31_s19, %s31_s19 }
   0xb   :  { %p2126_p3 = scmp.ne.s32.totalorder %s31_s19, %s2125_s27  ;;  %p2131_p5 = scmp.lt.s32.totalorder %s2125_s27, %s2125_s27 }
   0xd   :  { %p2132_p6 = por %p2131_p5, %p2130_p4 }
   0xf   :  { %p2133_p7 = pnand %p2132_p6, %p2126_p3 }
  0x11   :  { %2136 = shalt.err (!%p2133_p7)
}
  0x12   :  { %s2256_s28 = smov 1024   ;;  %s2257_s29 = smov 64  }
  0x13   :  { %36 = dma.hbm_to_vmem [thread:$0]  %s2688_s1, 16384, %s31_s19, [#allocation6], %s2256_s28, %s2256_s28, %s2257_s29  }
  0x14   :  { %s2258_s7 = smov [#allocation2]   ;;  %s2259_s9 = smov [#allocation7]  }
  0x15   :  { %s21_s8 = sshll.u32 %s2258_s7, 4  ;;  %s43_s10 = sshll.u32 %s2259_s9, 4  ;;  %s22_s8 = int_to_ptr.vmem [resolvable:$true] %s21_s8  ;;  %s44_s10 = int_to_ptr.vmem [resolvable:$true] %s43_s10 }
  0x16   :  { %s2137_s13 = scalar_lea.hbm %s2687_s0, 512 }
  0x17   :  { %p2138_p8 = scmp.ne.s32.totalorder %s2687_s0, %s2137_s13  ;;  %p2141_p9 = scmp.lt.u32.totalorder %s2137_s13, %s2687_s0 }
  0x19   :  { %p2143_p10 = pnand %p2141_p9, %p2138_p8 }
  0x1b   :  { %2146 = shalt.err (!%p2143_p10)
}
  0x1c   :  { %s2147_s1 = scalar_lea.vmem %s22_s8, 512  ;;  %p2152_p12 = scmp.lt.s32.totalorder %s22_s8, %s22_s8 }
  0x1d   :  { %p2148_p11 = scmp.ne.s32.totalorder %s22_s8, %s2147_s1  ;;  %p2153_p13 = scmp.lt.s32.totalorder %s2147_s1, %s2147_s1 }
  0x1f   :  { %p2154_p0 = por %p2153_p13, %p2152_p12 }
  0x21   :  { %p2155_p1 = pnand %p2154_p0, %p2148_p11 }
  0x23   :  { %2158 = shalt.err (!%p2155_p1)
}
  0x24   :  { %24 = dma.hbm_to_vmem [thread:$0]  %s2687_s0, 512, %s22_s8, [#allocation3]  }
  0x25   :  { %s2159_s22 = scalar_lea.hbm %s2689_s2, 16 }
  0x26   :  { %p2160_p2 = scmp.ne.s32.totalorder %s2689_s2, %s2159_s22  ;;  %p2163_p3 = scmp.lt.u32.totalorder %s2159_s22, %s2689_s2 }
  0x28   :  { %p2165_p4 = pnand %p2163_p3, %p2160_p2 }
  0x2a   :  { %2168 = shalt.err (!%p2165_p4)
}
  0x2b   :  { %s2169_s27 = scalar_lea.vmem %s44_s10, 16  ;;  %s2173_s30 = scalar_lea.vmem %s44_s10, 32 }
  0x2c   :  { %p2170_p5 = scmp.ne.s32.totalorder %s44_s10, %s2169_s27  ;;  %p2174_p6 = scmp.lt.s32.totalorder %s44_s10, %s44_s10 }
  0x2d   :  { %p2175_p7 = scmp.lt.s32.totalorder %s2173_s30, %s2169_s27 }
  0x2f   :  { %p2176_p8 = por %p2175_p7, %p2174_p6 }
  0x31   :  { %p2177_p9 = pnand %p2176_p8, %p2170_p5 }
  0x33   :  { %2180 = shalt.err (!%p2177_p9)
}
  0x34   :  { %46 = dma.hbm_to_vmem [thread:$0]  %s2689_s2, 16, %s44_s10, [#allocation6]  }
  0x35   :  { %2247 = dma.done.wait [#allocation3], 512  }
  0x36   :  { %2248 = vsyncadd [#allocation3], 4294966784 }
  0x37   :  { %2249 = dma.done.wait [#allocation6], 16400  }
  0x38   :  { %2250 = vsyncadd [#allocation6], 4294950896  ;;  %v62_v0 = vld [vmem:[#allocation5 + $0x8] sm:$0xff]  ;;  %v61_v2 = vld [vmem:[#allocation5] sm:$0xff]  ;;  %s2262_s2 = smov [#allocation8]  }
  0x39   :  { %v70_v1 = vld [vmem:[#allocation5 + $0x48] sm:$0xff]  ;;  %v69_v4 = vld [vmem:[#allocation5 + $0x40] sm:$0xff]  ;;  %v64_v49 = vld [vmem:[#allocation5 + $0x18] sm:$0xff]  ;;  %s1903_s7 = sshll.u32 %s2262_s2, 4  ;;  %s1904_s7 = int_to_ptr.vmem [resolvable:$true] %s1903_s7 }
  0x3a   :  { %v190_v3 = vpack.c.bf16 %v70_v1, %v62_v0  ;;  %v78_v5 = vld [vmem:[#allocation5 + $0x88] sm:$0xff]  ;;  %v189_v7 = vpack.c.bf16 %v69_v4, %v61_v2  ;;  %v77_v9 = vld [vmem:[#allocation5 + $0x80] sm:$0xff]  ;;  %v72_v50 = vld [vmem:[#allocation5 + $0x58] sm:$0xff]  ;;  %s2181_s8 = scalar_lea.vmem %s1904_s7, 128  ;;  %p2186_p11 = scmp.lt.s32.totalorder %s1904_s7, %s1904_s7 }
  0x3b   :  { %v86_v6 = vld [vmem:[#allocation5 + $0xc8] sm:$0xff]  ;;  %v85_v10 = vld [vmem:[#allocation5 + $0xc0] sm:$0xff]  ;;  %v192_v52 = vpack.c.bf16 %v72_v50, %v64_v49  ;;  %v63_v53 = vld [vmem:[#allocation5 + $0x10] sm:$0xff]  ;;  %p2182_p10 = scmp.ne.s32.totalorder %s1904_s7, %s2181_s8  ;;  %p2187_p12 = scmp.lt.s32.totalorder %s2181_s8, %s2181_s8 }
  0x3c   :  { %v198_v8 = vpack.c.bf16 %v86_v6, %v78_v5  ;;  %288 = vmatprep.subr.bf16.mxu0 %v190_v3  ;;  %v94_v11 = vld [vmem:[#allocation5 + $0x108] sm:$0xff]  ;;  %v197_v13 = vpack.c.bf16 %v85_v10, %v77_v9  ;;  %v2334_v15 = vld [vmem:[#allocation2] sm:$0xff]  ;;  %v71_v54 = vld [vmem:[#allocation5 + $0x50] sm:$0xff] }
  0x3d   :  { %289 = vmatpush1.bf16.xpose.msra.mxu0 %v189_v7  ;;  %v102_v12 = vld [vmem:[#allocation5 + $0x148] sm:$0xff]  ;;  %v1944_v16 = vcombine.high %v2334_v15, %v2334_v15  ;;  %v93_v17 = vld [vmem:[#allocation5 + $0x100] sm:$0xff]  ;;  %v80_v56 = vld [vmem:[#allocation5 + $0x98] sm:$0xff]  ;;  %v1943_v58 = vcombine.low %v2334_v15, %v2334_v15  ;;  %v191_v59 = vpack.c.bf16 %v71_v54, %v63_v53  ;;  %p2188_p13 = por %p2187_p12, %p2186_p11 }
  0x3e   :  { %290 = vmatprep.subr.bf16.mxu0 %v198_v8  ;;  %v206_v14 = vpack.c.bf16 %v102_v12, %v94_v11  ;;  %v101_v18 = vld [vmem:[#allocation5 + $0x140] sm:$0xff]  ;;  %v110_v19 = vld [vmem:[#allocation5 + $0x188] sm:$0xff]  ;;  %v88_v57 = vld [vmem:[#allocation5 + $0xd8] sm:$0xff] }
  0x3f   :  { %320 = vmatprep.mubr.bf16.mxu0 %v1944_v16  ;;  %v118_v20 = vld [vmem:[#allocation5 + $0x1c8] sm:$0xff]  ;;  %v205_v21 = vpack.c.bf16 %v101_v18, %v93_v17  ;;  %v109_v23 = vld [vmem:[#allocation5 + $0x180] sm:$0xff]  ;;  %v200_v61 = vpack.c.bf16 %v88_v57, %v80_v56  ;;  %v79_v62 = vld [vmem:[#allocation5 + $0x90] sm:$0xff]  ;;  %p2189_p0 = pnand %p2188_p13, %p2182_p10 }
  0x40   :  { %v214_v22 = vpack.c.bf16 %v118_v20, %v110_v19  ;;  %v117_v24 = vld [vmem:[#allocation5 + $0x1c0] sm:$0xff]  ;;  %v126_v25 = vld [vmem:[#allocation5 + $0x208] sm:$0xff]  ;;  %v87_v63 = vld [vmem:[#allocation5 + $0xd0] sm:$0xff] }
  0x41   :  { %v134_v26 = vld [vmem:[#allocation5 + $0x248] sm:$0xff]  ;;  %v213_v27 = vpack.c.bf16 %v117_v24, %v109_v23  ;;  %v125_v29 = vld [vmem:[#allocation5 + $0x200] sm:$0xff]  ;;  %v96_v0 = vld [vmem:[#allocation5 + $0x118] sm:$0xff]  ;;  %v199_v2 = vpack.c.bf16 %v87_v63, %v79_v62 }
  0x42   :  { %v222_v28 = vpack.c.bf16 %v134_v26, %v126_v25  ;;  %v133_v30 = vld [vmem:[#allocation5 + $0x240] sm:$0xff]  ;;  %v142_v31 = vld [vmem:[#allocation5 + $0x288] sm:$0xff]  ;;  %v104_v1 = vld [vmem:[#allocation5 + $0x158] sm:$0xff] }
  0x43   :  { %v150_v32 = vld [vmem:[#allocation5 + $0x2c8] sm:$0xff]  ;;  %v221_v33 = vpack.c.bf16 %v133_v30, %v125_v29  ;;  %v141_v35 = vld [vmem:[#allocation5 + $0x280] sm:$0xff]  ;;  %v208_v3 = vpack.c.bf16 %v104_v1, %v96_v0  ;;  %v95_v4 = vld [vmem:[#allocation5 + $0x110] sm:$0xff] }
  0x44   :  { %v230_v34 = vpack.c.bf16 %v150_v32, %v142_v31  ;;  %v149_v36 = vld [vmem:[#allocation5 + $0x2c0] sm:$0xff]  ;;  %v158_v37 = vld [vmem:[#allocation5 + $0x308] sm:$0xff]  ;;  %v103_v5 = vld [vmem:[#allocation5 + $0x150] sm:$0xff] }
  0x45   :  { %291 = vmatpush1.bf16.xpose.msra.mxu0 %v197_v13  ;;  %v166_v38 = vld [vmem:[#allocation5 + $0x348] sm:$0xff]  ;;  %v229_v39 = vpack.c.bf16 %v149_v36, %v141_v35  ;;  %v157_v41 = vld [vmem:[#allocation5 + $0x300] sm:$0xff]  ;;  %v112_v6 = vld [vmem:[#allocation5 + $0x198] sm:$0xff]  ;;  %v207_v8 = vpack.c.bf16 %v103_v5, %v95_v4 }
  0x46   :  { %292 = vmatprep.subr.bf16.mxu0 %v206_v14  ;;  %v238_v40 = vpack.c.bf16 %v166_v38, %v158_v37  ;;  %v165_v42 = vld [vmem:[#allocation5 + $0x340] sm:$0xff]  ;;  %v174_v43 = vld [vmem:[#allocation5 + $0x388] sm:$0xff]  ;;  %v120_v7 = vld [vmem:[#allocation5 + $0x1d8] sm:$0xff] }
  0x47   :  { %v182_v44 = vld [vmem:[#allocation5 + $0x3c8] sm:$0xff]  ;;  %v237_v45 = vpack.c.bf16 %v165_v42, %v157_v41  ;;  %v173_v47 = vld [vmem:[#allocation5 + $0x380] sm:$0xff]  ;;  %v216_v9 = vpack.c.bf16 %v120_v7, %v112_v6  ;;  %v111_v10 = vld [vmem:[#allocation5 + $0x190] sm:$0xff] }
  0x48   :  { %v246_v46 = vpack.c.bf16 %v182_v44, %v174_v43  ;;  %v181_v48 = vld [vmem:[#allocation5 + $0x3c0] sm:$0xff]  ;;  %v2338_v55 = vld [vmem:[#allocation2 + $0x8] sm:$0xff]  ;;  %v119_v11 = vld [vmem:[#allocation5 + $0x1d0] sm:$0xff] }
  0x49   :  { %v245_v51 = vpack.c.bf16 %v181_v48, %v173_v47  ;;  %v1946_v60 = vcombine.high %v2338_v55, %v2338_v55  ;;  %v128_v12 = vld [vmem:[#allocation5 + $0x218] sm:$0xff]  ;;  %v215_v14 = vpack.c.bf16 %v119_v11, %v111_v10  ;;  %v127_v17 = vld [vmem:[#allocation5 + $0x210] sm:$0xff]  ;;  %v66_v37 = vld [vmem:[#allocation5 + $0x28] sm:$0xff] }
  0x4a   :  { %v136_v13 = vld [vmem:[#allocation5 + $0x258] sm:$0xff]  ;;  %v135_v18 = vld [vmem:[#allocation5 + $0x250] sm:$0xff]  ;;  %v74_v38 = vld [vmem:[#allocation5 + $0x68] sm:$0xff] }
  0x4b   :  { %v224_v16 = vpack.c.bf16 %v136_v13, %v128_v12  ;;  %v144_v19 = vld [vmem:[#allocation5 + $0x298] sm:$0xff]  ;;  %v143_v23 = vld [vmem:[#allocation5 + $0x290] sm:$0xff]  ;;  %v65_v41 = vld [vmem:[#allocation5 + $0x20] sm:$0xff] }
  0x4c   :  { %v152_v20 = vld [vmem:[#allocation5 + $0x2d8] sm:$0xff]  ;;  %v151_v24 = vld [vmem:[#allocation5 + $0x2d0] sm:$0xff]  ;;  %v73_v42 = vld [vmem:[#allocation5 + $0x60] sm:$0xff] }
  0x4d   :  { %293 = vmatpush1.bf16.xpose.msra.mxu0 %v205_v21  ;;  %v223_v21 = vpack.c.bf16 %v135_v18, %v127_v17  ;;  %v160_v25 = vld [vmem:[#allocation5 + $0x318] sm:$0xff]  ;;  %v159_v29 = vld [vmem:[#allocation5 + $0x310] sm:$0xff]  ;;  %v82_v44 = vld [vmem:[#allocation5 + $0xa8] sm:$0xff]  ;;  %v193_v47 = vpack.c.bf16 %v73_v42, %v65_v41 }
  0x4e   :  { %294 = vmatprep.subr.bf16.mxu0 %v214_v22  ;;  %v232_v22 = vpack.c.bf16 %v152_v20, %v144_v19  ;;  %v168_v26 = vld [vmem:[#allocation5 + $0x358] sm:$0xff]  ;;  %v167_v30 = vld [vmem:[#allocation5 + $0x350] sm:$0xff]  ;;  %v81_v50 = vld [vmem:[#allocation5 + $0xa0] sm:$0xff] }
  0x4f   :  { %v176_v31 = vld [vmem:[#allocation5 + $0x398] sm:$0xff]  ;;  %v175_v35 = vld [vmem:[#allocation5 + $0x390] sm:$0xff]  ;;  %v106_v53 = vld [vmem:[#allocation5 + $0x168] sm:$0xff] }
  0x50   :  { %v184_v32 = vld [vmem:[#allocation5 + $0x3d8] sm:$0xff]  ;;  %v183_v36 = vld [vmem:[#allocation5 + $0x3d0] sm:$0xff]  ;;  %v97_v57 = vld [vmem:[#allocation5 + $0x120] sm:$0xff] }
  0x51   :  { %v2344_v43 = vld [vmem:[#allocation2 + $0x10] sm:$0xff]  ;;  %v113_v63 = vld [vmem:[#allocation5 + $0x1a0] sm:$0xff]  ;;  %v130_v1 = vld [vmem:[#allocation5 + $0x228] sm:$0xff] }
  0x52   :  { %v1948_v48 = vcombine.high %v2344_v43, %v2344_v43  ;;  %v121_v0 = vld [vmem:[#allocation5 + $0x1e0] sm:$0xff]  ;;  %v146_v7 = vld [vmem:[#allocation5 + $0x2a8] sm:$0xff]  ;;  %v100_v41 = vld [vmem:[#allocation5 + $0x138] sm:$0xff] }
  0x53   :  { %v129_v5 = vld [vmem:[#allocation5 + $0x220] sm:$0xff]  ;;  %v162_v13 = vld [vmem:[#allocation5 + $0x328] sm:$0xff]  ;;  %v108_v42 = vld [vmem:[#allocation5 + $0x178] sm:$0xff] }
  0x54   :  { %v137_v6 = vld [vmem:[#allocation5 + $0x260] sm:$0xff]  ;;  %v178_v20 = vld [vmem:[#allocation5 + $0x3a8] sm:$0xff] }
  0x55   :  { %295 = vmatpush1.bf16.xpose.msra.mxu0 %v213_v27  ;;  %v231_v27 = vpack.c.bf16 %v151_v24, %v143_v23  ;;  %v145_v11 = vld [vmem:[#allocation5 + $0x2a0] sm:$0xff] }
  0x56   :  { %296 = vmatprep.subr.bf16.mxu0 %v222_v28  ;;  %v240_v28 = vpack.c.bf16 %v168_v26, %v160_v25  ;;  %v153_v12 = vld [vmem:[#allocation5 + $0x2e0] sm:$0xff]  ;;  %v68_v26 = vld [vmem:[#allocation5 + $0x38] sm:$0xff] }
  0x57   :  { %v161_v18 = vld [vmem:[#allocation5 + $0x320] sm:$0xff] }
  0x58   :  { %v169_v19 = vld [vmem:[#allocation5 + $0x360] sm:$0xff] }
  0x59   :  { %v177_v24 = vld [vmem:[#allocation5 + $0x3a0] sm:$0xff] }
  0x5a   :  { %v185_v25 = vld [vmem:[#allocation5 + $0x3e0] sm:$0xff] }
  0x5d   :  { %297 = vmatpush1.bf16.xpose.msra.mxu0 %v221_v33  ;;  %v239_v33 = vpack.c.bf16 %v167_v30, %v159_v29  ;;  %v67_v30 = vld [vmem:[#allocation5 + $0x30] sm:$0xff] }
  0x5e   :  { %298 = vmatprep.subr.bf16.mxu0 %v230_v34  ;;  %v248_v34 = vpack.c.bf16 %v184_v32, %v176_v31  ;;  %v75_v31 = vld [vmem:[#allocation5 + $0x70] sm:$0xff]  ;;  %v2350_v32 = vld [vmem:[#allocation2 + $0x18] sm:$0xff] }
  0x65   :  { %299 = vmatpush1.bf16.xpose.msra.mxu0 %v229_v39  ;;  %v247_v39 = vpack.c.bf16 %v183_v36, %v175_v35  ;;  %v1947_v35 = vcombine.low %v2344_v43, %v2344_v43  ;;  %v195_v36 = vpack.c.bf16 %v75_v31, %v67_v30 }
  0x66   :  { %300 = vmatprep.subr.bf16.mxu0 %v238_v40  ;;  %v194_v40 = vpack.c.bf16 %v74_v38, %v66_v37  ;;  %v1950_v37 = vcombine.high %v2350_v32, %v2350_v32 }
  0x6d   :  { %301 = vmatpush1.bf16.xpose.msra.mxu0 %v237_v45  ;;  %v90_v45 = vld [vmem:[#allocation5 + $0xe8] sm:$0xff] }
  0x6e   :  { %302 = vmatprep.subr.bf16.mxu0 %v246_v46  ;;  %v1945_v46 = vcombine.low %v2338_v55, %v2338_v55  ;;  %v202_v49 = vpack.c.bf16 %v90_v45, %v82_v44  ;;  %v212_v45 = vpack.c.bf16 %v108_v42, %v100_v41 }
  0x75   :  { %303 = vmatpush1.bf16.xpose.msra.mxu0 %v245_v51  ;;  %v89_v51 = vld [vmem:[#allocation5 + $0xe0] sm:$0xff] }
  0x76   :  { %328 = vmatprep.subr.bf16.mxu0 %v192_v52  ;;  %v98_v52 = vld [vmem:[#allocation5 + $0x128] sm:$0xff]  ;;  %v201_v54 = vpack.c.bf16 %v89_v51, %v81_v50 }
  0x77   :  { %v210_v56 = vpack.c.bf16 %v106_v53, %v98_v52  ;;  %v115_v52 = vld [vmem:[#allocation5 + $0x1b0] sm:$0xff] }
  0x78   :  { %v123_v53 = vld [vmem:[#allocation5 + $0x1f0] sm:$0xff] }
  0x7c   :  { %321 = vmatmul.mubr.bf16.vlgmr.msra.gmra.mrb[0].mxu0 %v1943_v58  ;;  %v105_v58 = vld [vmem:[#allocation5 + $0x160] sm:$0xff] }
  0x7d   :  { %329 = vmatpush1.bf16.xpose.msra.mxu0 %v191_v59  ;;  %360 = vmatprep.mubr.bf16.mxu0 %v1946_v60  ;;  %v114_v59 = vld [vmem:[#allocation5 + $0x1a8] sm:$0xff] }
  0x7e   :  { %330 = vmatprep.subr.bf16.mxu0 %v200_v61  ;;  %v122_v60 = vld [vmem:[#allocation5 + $0x1e8] sm:$0xff]  ;;  %v209_v61 = vpack.c.bf16 %v105_v58, %v97_v57  ;;  %v219_v57 = vpack.c.bf16 %v123_v53, %v115_v52  ;;  %v685_v53 = vunpack.c.h.bf16 %v2334_v15 }
  0x7f   :  { %v218_v62 = vpack.c.bf16 %v122_v60, %v114_v59  ;;  %v131_v59 = vld [vmem:[#allocation5 + $0x230] sm:$0xff] }
  0x80   :  { %v139_v60 = vld [vmem:[#allocation5 + $0x270] sm:$0xff] }
  0x85   :  { %331 = vmatpush1.bf16.xpose.msra.mxu0 %v199_v2  ;;  %v138_v2 = vld [vmem:[#allocation5 + $0x268] sm:$0xff] }
  0x86   :  { %332 = vmatprep.subr.bf16.mxu0 %v208_v3  ;;  %v217_v3 = vpack.c.bf16 %v121_v0, %v113_v63  ;;  %v226_v4 = vpack.c.bf16 %v138_v2, %v130_v1  ;;  %v227_v63 = vpack.c.bf16 %v139_v60, %v131_v59  ;;  %v147_v1 = vld [vmem:[#allocation5 + $0x2b0] sm:$0xff] }
  0x87   :  { %v155_v2 = vld [vmem:[#allocation5 + $0x2f0] sm:$0xff] }
  0x8d   :  { %333 = vmatpush1.bf16.xpose.msra.mxu0 %v207_v8  ;;  %v154_v8 = vld [vmem:[#allocation5 + $0x2e8] sm:$0xff] }
  0x8e   :  { %334 = vmatprep.subr.bf16.mxu0 %v216_v9  ;;  %v225_v9 = vpack.c.bf16 %v137_v6, %v129_v5  ;;  %v234_v10 = vpack.c.bf16 %v154_v8, %v146_v7  ;;  %v235_v5 = vpack.c.bf16 %v155_v2, %v147_v1  ;;  %v163_v7 = vld [vmem:[#allocation5 + $0x330] sm:$0xff] }
  0x8f   :  { %v171_v8 = vld [vmem:[#allocation5 + $0x370] sm:$0xff] }
  0x95   :  { %335 = vmatpush1.bf16.xpose.msra.mxu0 %v215_v14  ;;  %v170_v14 = vld [vmem:[#allocation5 + $0x368] sm:$0xff] }
  0x96   :  { %336 = vmatprep.subr.bf16.mxu0 %v224_v16  ;;  %v233_v16 = vpack.c.bf16 %v153_v12, %v145_v11  ;;  %v242_v17 = vpack.c.bf16 %v170_v14, %v162_v13  ;;  %v243_v11 = vpack.c.bf16 %v171_v8, %v163_v7  ;;  %v179_v13 = vld [vmem:[#allocation5 + $0x3b0] sm:$0xff]  ;;  %v478_v7 = vld [vmem:[#allocation7] sm:$0x1] }
  0x97   :  { %v187_v14 = vld [vmem:[#allocation5 + $0x3f0] sm:$0xff] }
  0x9d   :  { %337 = vmatpush1.bf16.xpose.msra.mxu0 %v223_v21  ;;  %v186_v21 = vld [vmem:[#allocation5 + $0x3e8] sm:$0xff] }
  0x9e   :  { %338 = vmatprep.subr.bf16.mxu0 %v232_v22  ;;  %v241_v22 = vpack.c.bf16 %v169_v19, %v161_v18  ;;  %v250_v23 = vpack.c.bf16 %v186_v21, %v178_v20  ;;  %v449_v18 = vlaneseq  ;;  %v1942_v20 = vld [vmem:[#allocation7] ss:$0 sm:$0xff] }
  0xa0   :  { %v2358_v19 = vand.u32 127, %v449_v18 }
  0xa2   :  { %vm453_vm0 = vcmp.lt.s32.totalorder %v2358_v19, 16 }
  0xa5   :  { %339 = vmatpush1.bf16.xpose.msra.mxu0 %v231_v27  ;;  %v76_v27 = vld [vmem:[#allocation5 + $0x78] sm:$0xff] }
  0xa6   :  { %340 = vmatprep.subr.bf16.mxu0 %v240_v28  ;;  %v249_v28 = vpack.c.bf16 %v185_v25, %v177_v24  ;;  %v196_v29 = vpack.c.bf16 %v76_v27, %v68_v26 }
  0xad   :  { %341 = vmatpush1.bf16.xpose.msra.mxu0 %v239_v33  ;;  %v84_v33 = vld [vmem:[#allocation5 + $0xb8] sm:$0xff] }
  0xae   :  { %342 = vmatprep.subr.bf16.mxu0 %v248_v34  ;;  %v92_v34 = vld [vmem:[#allocation5 + $0xf8] sm:$0xff] }
  0xaf   :  { %v204_v38 = vpack.c.bf16 %v92_v34, %v84_v33 }
  0xb5   :  { %343 = vmatpush1.bf16.xpose.msra.mxu0 %v247_v39  ;;  %v83_v39 = vld [vmem:[#allocation5 + $0xb0] sm:$0xff] }
  0xb6   :  { %368 = vmatprep.subr.bf16.mxu0 %v194_v40  ;;  %v91_v40 = vld [vmem:[#allocation5 + $0xf0] sm:$0xff] }
  0xb7   :  { %v203_v44 = vpack.c.bf16 %v91_v40, %v83_v39  ;;  %v2363_v39 = vshrl.u32 %v449_v18, 7  ;;  %v2260_v40 = vmov 1.0  }
  0xb9   :  { %vm503_vm1 = vcmp.eq.s32.totalorder %v2363_v39, %v2358_v19  ;;  %v493_v41 = vadd.s32 48, %v2363_v39  ;;  %vm475_vm3 = vcmp.lt.s32.totalorder %v2363_v39, 2  ;;  %v495_v52 = vadd.s32 64, %v2363_v39 }
  0xba   :  { %vm476_vm4 = vmand %vm475_vm3, %vm453_vm0  ;;  %v491_v59 = vadd.s32 32, %v2363_v39  ;;  %v497_v60 = vadd.s32 80, %v2363_v39  ;;  %v502_v8 = vadd.s32 120, %v2363_v39  ;;  %vm692_vm3 = vcmask 64512  }
  0xbb   :  { %vm509_vm2 = vcmp.eq.s32.totalorder %v493_v41, %v2358_v19  ;;  %vm511_vm8 = vcmp.eq.s32.totalorder %v495_v52, %v2358_v19 }
  0xbc   :  { %361 = vmatmul.mubr.bf16.vlgmr.msra.gmra.mrb[0].mxu0 %v1945_v46  ;;  %v99_v46 = vld [vmem:[#allocation5 + $0x130] sm:$0xff]  ;;  %2060 = vmatprep.mubr.msk.f32.mxu1 %vm509_vm2, %v2260_v40  ;;  %vm507_vm11 = vcmp.eq.s32.totalorder %v491_v59, %v2358_v19  ;;  %vm513_vm12 = vcmp.eq.s32.totalorder %v497_v60, %v2358_v19  ;;  %vm518_vm2 = vcmp.eq.s32.totalorder %v502_v8, %v2358_v19  ;;  %v1409_v60 = vld [vmem:[#allocation5 + $0xc0] sm:$0xff] }
  0xbd   :  { %369 = vmatpush1.bf16.xpose.msra.mxu0 %v193_v47  ;;  %400 = vmatprep.mubr.bf16.mxu0 %v1948_v48  ;;  %v107_v47 = vld [vmem:[#allocation5 + $0x170] sm:$0xff]  ;;  %v116_v48 = vld [vmem:[#allocation5 + $0x1b8] sm:$0xff] }
  0xbe   :  { %370 = vmatprep.subr.bf16.mxu0 %v202_v49  ;;  %v124_v49 = vld [vmem:[#allocation5 + $0x1f8] sm:$0xff]  ;;  %v211_v50 = vpack.c.bf16 %v107_v47, %v99_v46 }
  0xbf   :  { %v220_v51 = vpack.c.bf16 %v124_v49, %v116_v48  ;;  %v488_v48 = vadd.s32 8, %v2363_v39  ;;  %v489_v49 = vadd.s32 16, %v2363_v39 }
  0xc1   :  { %vm504_vm5 = vcmp.eq.s32.totalorder %v488_v48, %v2358_v19  ;;  %vm505_vm6 = vcmp.eq.s32.totalorder %v489_v49, %v2358_v19 }
  0xc5   :  { %371 = vmatpush1.bf16.xpose.msra.mxu0 %v201_v54  ;;  %v132_v54 = vld [vmem:[#allocation5 + $0x238] sm:$0xff] }
  0xc6   :  { %372 = vmatprep.subr.bf16.mxu0 %v210_v56  ;;  %v140_v56 = vld [vmem:[#allocation5 + $0x278] sm:$0xff] }
  0xc7   :  { %v228_v58 = vpack.c.bf16 %v140_v56, %v132_v54  ;;  %v490_v54 = vadd.s32 24, %v2363_v39 }
  0xc9   :  { %vm506_vm9 = vcmp.eq.s32.totalorder %v490_v54, %v2358_v19  ;;  %v1402_v54 = vld [vmem:[#allocation5 + $0x88] sm:$0xff] }
  0xcd   :  { %373 = vmatpush1.bf16.xpose.msra.mxu0 %v209_v61  ;;  %v148_v61 = vld [vmem:[#allocation5 + $0x2b8] sm:$0xff] }
  0xce   :  { %374 = vmatprep.subr.bf16.mxu0 %v218_v62  ;;  %v156_v62 = vld [vmem:[#allocation5 + $0x2f8] sm:$0xff] }
  0xcf   :  { %v236_v0 = vpack.c.bf16 %v156_v62, %v148_v61  ;;  %v684_v61 = vunpack.c.l.bf16 %v2334_v15  ;;  %v499_v15 = vadd.s32 96, %v2363_v39 }
  0xd1   :  { %vm515_vm15 = vcmp.eq.s32.totalorder %v499_v15, %v2358_v19 }
  0xd5   :  { %375 = vmatpush1.bf16.xpose.msra.mxu0 %v217_v3  ;;  %v164_v3 = vld [vmem:[#allocation5 + $0x338] sm:$0xff] }
  0xd6   :  { %376 = vmatprep.subr.bf16.mxu0 %v226_v4  ;;  %v172_v4 = vld [vmem:[#allocation5 + $0x378] sm:$0xff] }
  0xd7   :  { %v244_v6 = vpack.c.bf16 %v172_v4, %v164_v3  ;;  %v500_v3 = vadd.s32 104, %v2363_v39 }
  0xdd   :  { %377 = vmatpush1.bf16.xpose.msra.mxu0 %v225_v9  ;;  %v180_v9 = vld [vmem:[#allocation5 + $0x3b8] sm:$0xff] }
  0xde   :  { %378 = vmatprep.subr.bf16.mxu0 %v234_v10  ;;  %v188_v10 = vld [vmem:[#allocation5 + $0x3f8] sm:$0xff] }
  0xdf   :  { %v252_v12 = vpack.c.bf16 %v188_v10, %v180_v9 }
  0xe5   :  { %379 = vmatpush1.bf16.xpose.msra.mxu0 %v233_v16  ;;  %v251_v16 = vpack.c.bf16 %v187_v14, %v179_v13  ;;  %v686_v13 = vunpack.c.l.bf16 %v2338_v55 }
  0xe6   :  { %380 = vmatprep.subr.bf16.mxu0 %v242_v17  ;;  %v1949_v17 = vcombine.low %v2350_v32, %v2350_v32 }
  0xed   :  { %381 = vmatpush1.bf16.xpose.msra.mxu0 %v241_v22 }
  0xee   :  { %382 = vmatprep.subr.bf16.mxu0 %v250_v23 }
  0xf5   :  { %383 = vmatpush1.bf16.xpose.msra.mxu0 %v249_v28 }
  0xf6   :  { %408 = vmatprep.subr.bf16.mxu0 %v196_v29 }
  0xfc   :  { %401 = vmatmul.mubr.bf16.vlgmr.msra.gmra.mrb[0].mxu0 %v1947_v35 }
  0xfd   :  { %409 = vmatpush1.bf16.xpose.msra.mxu0 %v195_v36  ;;  %440 = vmatprep.mubr.bf16.mxu0 %v1950_v37 }
  0xfe   :  { %410 = vmatprep.subr.bf16.mxu0 %v204_v38 }
 0x105   :  { %411 = vmatpush1.bf16.xpose.msra.mxu0 %v203_v44 }
 0x106   :  { %412 = vmatprep.subr.bf16.mxu0 %v212_v45 }
 0x10d   :  { %413 = vmatpush1.bf16.xpose.msra.mxu0 %v211_v50  ;;  %v494_v50 = vadd.s32 56, %v2363_v39 }
 0x10e   :  { %414 = vmatprep.subr.bf16.mxu0 %v220_v51 }
 0x10f   :  { %vm510_vm7 = vcmp.eq.s32.totalorder %v494_v50, %v2358_v19 }
 0x115   :  { %415 = vmatpush1.bf16.xpose.msra.mxu0 %v219_v57  ;;  %v496_v57 = vadd.s32 72, %v2363_v39 }
 0x116   :  { %416 = vmatprep.subr.bf16.mxu0 %v228_v58 }
 0x117   :  { %vm512_vm10 = vcmp.eq.s32.totalorder %v496_v57, %v2358_v19 }
 0x11d   :  { %417 = vmatpush1.bf16.xpose.msra.mxu0 %v227_v63  ;;  %v492_v63 = vadd.s32 40, %v2363_v39 }
 0x11e   :  { %418 = vmatprep.subr.bf16.mxu0 %v236_v0  ;;  %v498_v0 = vadd.s32 88, %v2363_v39 }
 0x11f   :  { %vm508_vm13 = vcmp.eq.s32.totalorder %v492_v63, %v2358_v19  ;;  %v1410_v63 = vld [vmem:[#allocation5 + $0xc8] sm:$0xff] }
 0x120   :  { %vm514_vm14 = vcmp.eq.s32.totalorder %v498_v0, %v2358_v19 }
 0x125   :  { %419 = vmatpush1.bf16.xpose.msra.mxu0 %v235_v5  ;;  %v501_v5 = vadd.s32 112, %v2363_v39 }
 0x126   :  { %420 = vmatprep.subr.bf16.mxu0 %v244_v6 }
 0x12d   :  { %421 = vmatpush1.bf16.xpose.msra.mxu0 %v243_v11  ;;  %v2261_v11 = vmov 0.0  }
 0x12e   :  { %422 = vmatprep.subr.bf16.mxu0 %v252_v12  ;;  %v687_v12 = vunpack.c.h.bf16 %v2338_v55 }
 0x135   :  { %423 = vmatpush1.bf16.xpose.msra.mxu0 %v251_v16 }
 0x13c   :  { %441 = vmatmul.mubr.bf16.vlgmr.msra.gmra.mrb[0].mxu0 %v1949_v17  ;;  %v689_v17 = vunpack.c.h.bf16 %v2344_v43 }
 0x13d   :  { %2051 = vmatprep.mubr.msk.f32.mxu0 %vm503_vm1, %v2260_v40  ;;  %vm517_vm1 = vcmp.eq.s32.totalorder %v501_v5, %v2358_v19 }
 0x20f   :  { %v442_v21 = vpop.f32.mrb[0].mxu0 }
 0x210   :  { %v2077_v22 = vadd.f32 %v1942_v20, %v442_v21  ;;  %v444_v23 = vpop.f32.mrb[1].mxu0 }
 0x211   :  { %v445_v24 = vpop.f32.mrb[2].mxu0 }
 0x212   :  { %448 = vst [vmem:[#allocation8] sm:$0xff] %v2077_v22  ;;  %v446_v25 = vpop.f32.mrb[3].mxu0  ;;  %v454_v26 = vsel %vm453_vm0, %v2077_v22, -1e+30  ;;  %vm516_vm0 = vcmp.eq.s32.totalorder %v500_v3, %v2358_v19  ;;  %v1417_v3 = vld [vmem:[#allocation5 + $0x100] sm:$0xff] }
 0x213   :  { %455 = vmax.xlane.f32.xlu0 %v454_v26 }
 0x2a0   :  { %v456_v27 = vpop.xlane.xlu0 %455 }
 0x2a1   :  { %v457_v28 = vsub.f32 %v454_v26, %v456_v27 }
 0x2a3   :  { %v458_v29 = vmul.f32 1.442695, %v457_v28 }
 0x2a5   :  { %2108 = vpow2.f32 %v458_v29 }
 0x2af   :  { %v2109_v30 = vpop.eup %2108 }
 0x2b0   :  { %460 = vadd.xlane.f32.xlu0 %v2109_v30 }
 0x33d   :  { %v461_v31 = vpop.xlane.xlu0 %460 }
 0x33e   :  { %2110 = vrcp.f32 %v461_v31 }
 0x33f   :  { %2112 = vlog2.f32 %v461_v31  ;;  %v688_v31 = vunpack.c.l.bf16 %v2344_v43  ;;  %v690_v43 = vunpack.c.l.bf16 %v2350_v32 }
 0x348   :  { %v2111_v33 = vpop.eup %2110 }
 0x349   :  { %v2113_v34 = vpop.eup %2112  ;;  %v463_v36 = vmul.f32 %v2111_v33, %v2109_v30  ;;  %v691_v33 = vunpack.c.h.bf16 %v2350_v32 }
 0x34a   :  { %v465_v35 = vmul.f32 0.6931472, %v2113_v34 }
 0x34c   :  { %v466_v37 = vsub.f32 %v457_v28, %v465_v35 }
 0x34e   :  { %v467_v38 = vmul.f32 %v466_v37, %v463_v36 }
 0x350   :  { %468 = vadd.xlane.f32.xlu1 %v467_v38  ;;  %v2114_v38 = vld [vmem:[#allocation5] sm:$0xff] }
 0x3dd   :  { %v469_v42 = vpop.xlane.xlu1 %468 }
 0x3de   :  { %v470_v44 = vsub.f32 0.0, %v469_v42  ;;  %v1393_v42 = vld [vmem:[#allocation5 + $0x40] sm:$0xff] }
 0x3e0   :  { %v471_v45 = vadd.f32 %v470_v44, %v466_v37 }
 0x3e2   :  { %v472_v46 = vmul.f32 %v471_v45, %v463_v36  ;;  %v1386_v36 = vld [vmem:[#allocation5 + $0x8] sm:$0xff] }
 0x3e4   :  { %v473_v47 = vsub.f32 0.0, %v472_v46  ;;  %v1394_v46 = vld [vmem:[#allocation5 + $0x48] sm:$0xff] }
 0x3e6   :  { %v474_v51 = vmul.f32 0.5, %v473_v47 }
 0x3e8   :  { %2049 = vmatprep.subr.msk.mxu0 %vm476_vm4, %v474_v51  ;;  %2075 = vmatprep.subr.msk.mxu1 %vm476_vm4, %v474_v51  ;;  %v477_v56 = vsel %vm476_vm4, %v474_v51, 0.0 }
 0x3e9   :  { %2050 = vmatpush3.xpose.msk.msra.mxu0 %vm476_vm4, %v474_v51  ;;  %2076 = vmatpush3.xpose.msk.msra.mxu1 %vm476_vm4, %v474_v51  ;;  %v479_v58 = vrot.slane %v477_v56, 4  ;;  %v1401_v51 = vld [vmem:[#allocation5 + $0x80] sm:$0xff] }
 0x3ea   :  { %741 = vmatprep.subr.mxu1 %v685_v53 }
 0x3eb   :  { %v480_v62 = vadd.f32 %v479_v58, %v477_v56 }
 0x3ec   :  { %2052 = vmatmul.mubr.msk.f32.vlgmr.msra.gmra.mrb[4].mxu0 %vm504_vm5, %v2260_v40  ;;  %2061 = vmatmul.mubr.msk.f32.vlgmr.msra.gmra.mrb[0].mxu1 %vm510_vm7, %v2260_v40 }
 0x3ed   :  { %2054 = vmatprep.mubr.msk.f32.mxu0 %vm505_vm6, %v2260_v40  ;;  %2063 = vmatprep.mubr.msk.f32.mxu1 %vm511_vm8, %v2260_v40  ;;  %v481_v1 = vrot.slane %v480_v62, 2 }
 0x3ee   :  { %742 = vmatpush1.msra.mxu1 %v684_v61 }
 0x3ef   :  { %v482_v2 = vadd.f32 %v481_v1, %v480_v62  ;;  %902 = vmatprep.subr.mxu1 %v687_v12  ;;  %v1425_v12 = vld [vmem:[#allocation5 + $0x140] sm:$0xff] }
 0x3f0   :  { %2055 = vmatmul.mubr.msk.f32.gmra.mrb[6].mxu0 %vm506_vm9, %v2260_v40  ;;  %2064 = vmatmul.mubr.msk.f32.gmra.mrb[2].mxu1 %vm512_vm10, %v2260_v40 }
 0x3f1   :  { %2057 = vmatprep.mubr.msk.f32.mxu0 %vm507_vm11, %v2260_v40  ;;  %2066 = vmatprep.mubr.msk.f32.mxu1 %vm513_vm12, %v2260_v40  ;;  %v483_v4 = vrot.slane %v482_v2, 1 }
 0x3f3   :  { %v484_v6 = vadd.f32 %v483_v4, %v482_v2 }
 0x3f4   :  { %2058 = vmatmul.mubr.msk.f32.gmra.mrb[8].mxu0 %vm508_vm13, %v2260_v40  ;;  %2067 = vmatmul.mubr.msk.f32.gmra.mrb[4].mxu1 %vm514_vm14, %v2260_v40 }
 0x3f5   :  { %2069 = vmatprep.mubr.msk.f32.mxu1 %vm515_vm15, %v2260_v40  ;;  %v485_v9 = vmul.f32 0.001, %v484_v6  ;;  %v1418_v6 = vld [vmem:[#allocation5 + $0x108] sm:$0xff] }
 0x3f7   :  { %v486_v10 = vsub.f32 %v478_v7, %v485_v9 }
 0x3f8   :  { %2070 = vmatmul.mubr.msk.f32.gmra.mrb[6].mxu1 %vm516_vm0, %v2260_v40 }
 0x3f9   :  { %2072 = vmatprep.mubr.msk.f32.mxu1 %vm517_vm1, %v2260_v40  ;;  %487 = vst [vmem:[#allocation11] sm:$0x1] %v486_v10 }
 0x3fc   :  { %2073 = vmatmul.mubr.msk.f32.gmra.mrb[8].mxu1 %vm518_vm2, %v2260_v40 }
 0x3fd   :  { %805 = vmatprep.mubr.f32.mxu1 %v2261_v11 }
 0x4bf   :  { %v2421_v14 = vpop.f32.mrb[4].mxu0  ;;  %v2423_v16 = vpop.f32.mrb[0].mxu1 }
 0x4c0   :  { %v2426_v18 = vpop.f32.mrb[5].mxu0  ;;  %v2428_v19 = vpop.f32.mrb[1].mxu1 }
 0x4c1   :  { %1968 = vmatmul.mubr.msk.f32.vlgmr.msra.gmra.mrb[10].mxu1 %vm692_vm3, %v2426_v18 }
 0x4c2   :  { %811 = vmatprep.mubr.f32.mxu1 %v2261_v11  ;;  %903 = vmatpush1.msra.mxu1 %v686_v13 }
 0x4c3   :  { %v2433_v20 = vpop.f32.mrb[6].mxu0  ;;  %v2435_v21 = vpop.f32.mrb[2].mxu1  ;;  %1063 = vmatprep.subr.mxu1 %v689_v17 }
 0x4c4   :  { %v2437_v55 = vpop.f32.mrb[7].mxu0  ;;  %v2439_v22 = vpop.f32.mrb[3].mxu1 }
 0x4c5   :  { %1969 = vmatmul.mubr.msk.f32.gmra.mrb[12].mxu1 %vm692_vm3, %v2421_v14 }
 0x4c6   :  { %817 = vmatprep.mubr.f32.mxu1 %v2261_v11 }
 0x4c7   :  { %v2444_v23 = vpop.f32.mrb[8].mxu0  ;;  %v2446_v24 = vpop.f32.mrb[4].mxu1 }
 0x4c8   :  { %v2448_v25 = vpop.f32.mrb[9].mxu0  ;;  %v2450_v26 = vpop.f32.mrb[5].mxu1 }
 0x4c9   :  { %1970 = vmatmul.mubr.msk.f32.gmra.mrb[14].mxu1 %vm692_vm3, %v2437_v55 }
 0x4ca   :  { %823 = vmatprep.mubr.f32.mxu1 %v2261_v11 }
 0x4cb   :  { %v2455_v27 = vpop.f32.mrb[6].mxu1 }
 0x4cc   :  { %v2457_v28 = vpop.f32.mrb[7].mxu1 }
 0x4cd   :  { %1971 = vmatmul.mubr.msk.f32.gmra.mrb[16].mxu1 %vm692_vm3, %v2433_v20 }
 0x4ce   :  { %829 = vmatprep.mubr.f32.mxu1 %v2261_v11 }
 0x4cf   :  { %v2462_v29 = vpop.f32.mrb[8].mxu1 }
 0x4d0   :  { %v2464_v30 = vpop.f32.mrb[9].mxu1 }
 0x4d1   :  { %1972 = vmatmul.mubr.msk.f32.gmra.mrb[18].mxu1 %vm692_vm3, %v2448_v25 }
 0x4d2   :  { %835 = vmatprep.mubr.f32.mxu1 %v2261_v11 }
 0x4d5   :  { %1973 = vmatmul.mubr.msk.f32.gmra.mrb[20].mxu1 %vm692_vm3, %v2444_v23 }
 0x4d6   :  { %841 = vmatprep.mubr.f32.mxu1 %v2261_v11 }
 0x4d9   :  { %1974 = vmatmul.mubr.msk.f32.gmra.mrb[22].mxu1 %vm692_vm3, %v2428_v19 }
 0x4da   :  { %847 = vmatprep.mubr.f32.mxu1 %v2261_v11 }
 0x4dd   :  { %1975 = vmatmul.mubr.msk.f32.gmra.mrb[24].mxu1 %vm692_vm3, %v2423_v16 }
 0x4de   :  { %853 = vmatprep.mubr.f32.mxu1 %v2261_v11 }
 0x4e1   :  { %1976 = vmatmul.mubr.msk.f32.gmra.mrb[26].mxu1 %vm692_vm3, %v2439_v22 }
 0x4e2   :  { %859 = vmatprep.mubr.f32.mxu1 %v2261_v11 }
 0x4e5   :  { %1977 = vmatmul.mubr.msk.f32.gmra.mrb[28].mxu1 %vm692_vm3, %v2435_v21 }
 0x4e6   :  { %865 = vmatprep.mubr.f32.mxu1 %v2261_v11 }
 0x4e9   :  { %1978 = vmatmul.mubr.msk.f32.gmra.mrb[30].mxu1 %vm692_vm3, %v2450_v26 }
 0x4ea   :  { %871 = vmatprep.mubr.f32.mxu1 %v2261_v11 }
 0x4ed   :  { %1979 = vmatmul.mubr.msk.f32.gmra.mrb[32].mxu1 %vm692_vm3, %v2446_v24 }
 0x4ee   :  { %877 = vmatprep.mubr.f32.mxu1 %v2261_v11 }
 0x4f1   :  { %1980 = vmatmul.mubr.msk.f32.gmra.mrb[34].mxu1 %vm692_vm3, %v2457_v28 }
 0x4f2   :  { %883 = vmatprep.mubr.f32.mxu1 %v2261_v11 }
 0x4f5   :  { %1981 = vmatmul.mubr.msk.f32.gmra.mrb[36].mxu1 %vm692_vm3, %v2455_v27 }
 0x4f6   :  { %889 = vmatprep.mubr.f32.mxu1 %v2261_v11 }
 0x4f9   :  { %1982 = vmatmul.mubr.msk.f32.gmra.mrb[38].mxu1 %vm692_vm3, %v2464_v30 }
 0x4fa   :  { %895 = vmatprep.mubr.f32.mxu1 %v2261_v11 }
 0x4fd   :  { %1983 = vmatmul.mubr.msk.f32.gmra.mrb[40].mxu1 %vm692_vm3, %v2462_v29 }
 0x4fe   :  { %966 = vmatprep.mubr.f32.mxu1 %v2261_v11 }
 0x501   :  { %1984 = vmatmul.mubr.msk.f32.vlgmr.msra.gmra.mrb[42].mxu1 %vm692_vm3, %v2426_v18 }
 0x502   :  { %972 = vmatprep.mubr.f32.mxu1 %v2261_v11  ;;  %1064 = vmatpush1.msra.mxu1 %v688_v31 }
 0x503   :  { %1224 = vmatprep.subr.mxu1 %v691_v33 }
 0x505   :  { %1985 = vmatmul.mubr.msk.f32.gmra.mrb[44].mxu1 %vm692_vm3, %v2421_v14 }
 0x506   :  { %978 = vmatprep.mubr.f32.mxu1 %v2261_v11 }
 0x509   :  { %1986 = vmatmul.mubr.msk.f32.gmra.mrb[46].mxu1 %vm692_vm3, %v2437_v55 }
 0x50a   :  { %984 = vmatprep.mubr.f32.mxu1 %v2261_v11 }
 0x50d   :  { %1987 = vmatmul.mubr.msk.f32.gmra.mrb[48].mxu1 %vm692_vm3, %v2433_v20 }
 0x50e   :  { %990 = vmatprep.mubr.f32.mxu1 %v2261_v11 }
 0x511   :  { %1988 = vmatmul.mubr.msk.f32.gmra.mrb[50].mxu1 %vm692_vm3, %v2448_v25 }
 0x512   :  { %996 = vmatprep.mubr.f32.mxu1 %v2261_v11 }
 0x515   :  { %1989 = vmatmul.mubr.msk.f32.gmra.mrb[52].mxu1 %vm692_vm3, %v2444_v23 }
 0x516   :  { %1002 = vmatprep.mubr.f32.mxu1 %v2261_v11 }
 0x519   :  { %1990 = vmatmul.mubr.msk.f32.gmra.mrb[54].mxu1 %vm692_vm3, %v2428_v19 }
 0x51a   :  { %1008 = vmatprep.mubr.f32.mxu1 %v2261_v11 }
 0x51d   :  { %1991 = vmatmul.mubr.msk.f32.gmra.mrb[56].mxu1 %vm692_vm3, %v2423_v16 }
 0x51e   :  { %1014 = vmatprep.mubr.f32.mxu1 %v2261_v11 }
 0x521   :  { %1992 = vmatmul.mubr.msk.f32.gmra.mrb[58].mxu1 %vm692_vm3, %v2439_v22 }
 0x522   :  { %1020 = vmatprep.mubr.f32.mxu1 %v2261_v11 }
 0x525   :  { %1993 = vmatmul.mubr.msk.f32.gmra.mrb[60].mxu1 %vm692_vm3, %v2435_v21 }
 0x526   :  { %1026 = vmatprep.mubr.f32.mxu1 %v2261_v11 }
 0x529   :  { %1994 = vmatmul.mubr.msk.f32.gmra.mrb[62].mxu1 %vm692_vm3, %v2450_v26 }
 0x52a   :  { %1032 = vmatprep.mubr.f32.mxu1 %v2261_v11 }
 0x52d   :  { %1995 = vmatmul.mubr.msk.f32.gmra.mrb[64].mxu1 %vm692_vm3, %v2446_v24 }
 0x52e   :  { %1038 = vmatprep.mubr.f32.mxu1 %v2261_v11 }
 0x531   :  { %1996 = vmatmul.mubr.msk.f32.gmra.mrb[66].mxu1 %vm692_vm3, %v2457_v28 }
 0x532   :  { %1044 = vmatprep.mubr.f32.mxu1 %v2261_v11 }
 0x535   :  { %1997 = vmatmul.mubr.msk.f32.gmra.mrb[68].mxu1 %vm692_vm3, %v2455_v27 }
 0x536   :  { %1050 = vmatprep.mubr.f32.mxu1 %v2261_v11 }
 0x539   :  { %1998 = vmatmul.mubr.msk.f32.gmra.mrb[70].mxu1 %vm692_vm3, %v2464_v30 }
 0x53a   :  { %1056 = vmatprep.mubr.f32.mxu1 %v2261_v11 }
 0x53d   :  { %1999 = vmatmul.mubr.msk.f32.gmra.mrb[72].mxu1 %vm692_vm3, %v2462_v29 }
 0x53e   :  { %1127 = vmatprep.mubr.f32.mxu1 %v2261_v11 }
 0x541   :  { %2000 = vmatmul.mubr.msk.f32.vlgmr.msra.gmra.mrb[74].mxu1 %vm692_vm3, %v2426_v18 }
 0x542   :  { %1133 = vmatprep.mubr.f32.mxu1 %v2261_v11  ;;  %1225 = vmatpush1.msra.mxu1 %v690_v43  ;;  %v1441_v43 = vld [vmem:[#allocation5 + $0x1c0] sm:$0xff] }
 0x545   :  { %2001 = vmatmul.mubr.msk.f32.gmra.mrb[76].mxu1 %vm692_vm3, %v2421_v14 }
 0x546   :  { %1139 = vmatprep.mubr.f32.mxu1 %v2261_v11 }
 0x549   :  { %2002 = vmatmul.mubr.msk.f32.gmra.mrb[78].mxu1 %vm692_vm3, %v2437_v55 }
 0x54a   :  { %1145 = vmatprep.mubr.f32.mxu1 %v2261_v11 }
 0x54d   :  { %2003 = vmatmul.mubr.msk.f32.gmra.mrb[80].mxu1 %vm692_vm3, %v2433_v20 }
 0x54e   :  { %1151 = vmatprep.mubr.f32.mxu1 %v2261_v11 }
 0x551   :  { %2004 = vmatmul.mubr.msk.f32.gmra.mrb[82].mxu1 %vm692_vm3, %v2448_v25 }
 0x552   :  { %1157 = vmatprep.mubr.f32.mxu1 %v2261_v11 }
 0x555   :  { %2005 = vmatmul.mubr.msk.f32.gmra.mrb[84].mxu1 %vm692_vm3, %v2444_v23 }
 0x556   :  { %1163 = vmatprep.mubr.f32.mxu1 %v2261_v11 }
 0x559   :  { %2006 = vmatmul.mubr.msk.f32.gmra.mrb[86].mxu1 %vm692_vm3, %v2428_v19 }
 0x55a   :  { %1169 = vmatprep.mubr.f32.mxu1 %v2261_v11 }
 0x55d   :  { %2007 = vmatmul.mubr.msk.f32.gmra.mrb[88].mxu1 %vm692_vm3, %v2423_v16 }
 0x55e   :  { %1175 = vmatprep.mubr.f32.mxu1 %v2261_v11 }
 0x561   :  { %2008 = vmatmul.mubr.msk.f32.gmra.mrb[90].mxu1 %vm692_vm3, %v2439_v22 }
 0x562   :  { %1181 = vmatprep.mubr.f32.mxu1 %v2261_v11 }
 0x565   :  { %2009 = vmatmul.mubr.msk.f32.gmra.mrb[92].mxu1 %vm692_vm3, %v2435_v21 }
 0x566   :  { %1187 = vmatprep.mubr.f32.mxu1 %v2261_v11 }
 0x569   :  { %2010 = vmatmul.mubr.msk.f32.gmra.mrb[94].mxu1 %vm692_vm3, %v2450_v26 }
 0x56a   :  { %1193 = vmatprep.mubr.f32.mxu1 %v2261_v11 }
 0x56d   :  { %2011 = vmatmul.mubr.msk.f32.gmra.mrb[96].mxu1 %vm692_vm3, %v2446_v24 }
 0x56e   :  { %1199 = vmatprep.mubr.f32.mxu1 %v2261_v11 }
 0x571   :  { %2012 = vmatmul.mubr.msk.f32.gmra.mrb[98].mxu1 %vm692_vm3, %v2457_v28 }
 0x572   :  { %1205 = vmatprep.mubr.f32.mxu1 %v2261_v11 }
 0x575   :  { %2013 = vmatmul.mubr.msk.f32.gmra.mrb[100].mxu1 %vm692_vm3, %v2455_v27 }
 0x576   :  { %1211 = vmatprep.mubr.f32.mxu1 %v2261_v11 }
 0x579   :  { %2014 = vmatmul.mubr.msk.f32.gmra.mrb[102].mxu1 %vm692_vm3, %v2464_v30 }
 0x57a   :  { %1217 = vmatprep.mubr.f32.mxu1 %v2261_v11 }
 0x57d   :  { %2015 = vmatmul.mubr.msk.f32.gmra.mrb[104].mxu1 %vm692_vm3, %v2462_v29 }
 0x57e   :  { %1288 = vmatprep.mubr.f32.mxu1 %v2261_v11 }
 0x581   :  { %2016 = vmatmul.mubr.msk.f32.vlgmr.msra.gmra.mrb[106].mxu1 %vm692_vm3, %v2426_v18 }
 0x582   :  { %1294 = vmatprep.mubr.f32.mxu1 %v2261_v11 }
 0x585   :  { %2017 = vmatmul.mubr.msk.f32.gmra.mrb[108].mxu1 %vm692_vm3, %v2421_v14 }
 0x586   :  { %1300 = vmatprep.mubr.f32.mxu1 %v2261_v11 }
 0x589   :  { %2018 = vmatmul.mubr.msk.f32.gmra.mrb[110].mxu1 %vm692_vm3, %v2437_v55 }
 0x58a   :  { %1306 = vmatprep.mubr.f32.mxu1 %v2261_v11 }
 0x58d   :  { %2019 = vmatmul.mubr.msk.f32.gmra.mrb[112].mxu1 %vm692_vm3, %v2433_v20 }
 0x58e   :  { %1312 = vmatprep.mubr.f32.mxu1 %v2261_v11 }
 0x591   :  { %2020 = vmatmul.mubr.msk.f32.gmra.mrb[114].mxu1 %vm692_vm3, %v2448_v25 }
 0x592   :  { %1318 = vmatprep.mubr.f32.mxu1 %v2261_v11 }
 0x594   :  { %v807_v32 = vpop.f32.mrb[10].mxu1 }
 0x595   :  { %2021 = vmatmul.mubr.msk.f32.gmra.mrb[116].mxu1 %vm692_vm3, %v2444_v23  ;;  %v1513_v34 = vmul.f32 0.001, %v807_v32  ;;  %v809_v35 = vpop.f32.mrb[11].mxu1  ;;  %v1434_v23 = vld [vmem:[#allocation5 + $0x188] sm:$0xff] }
 0x596   :  { %v1514_v37 = vmul.f32 0.001, %v809_v35  ;;  %1324 = vmatprep.mubr.f32.mxu1 %v2261_v11  ;;  %v1442_v35 = vld [vmem:[#allocation5 + $0x1c8] sm:$0xff] }
 0x597   :  { %v1641_v39 = vsub.f32 %v2114_v38, %v1513_v34 }
 0x598   :  { %v1642_v40 = vsub.f32 %v1386_v36, %v1514_v37  ;;  %v813_v41 = vpop.f32.mrb[12].mxu1 }
 0x599   :  { %1769 = vst [vmem:[#allocation9] sm:$0xff] %v1641_v39  ;;  %v1521_v44 = vmul.f32 0.001, %v813_v41  ;;  %v815_v45 = vpop.f32.mrb[13].mxu1  ;;  %2022 = vmatmul.mubr.msk.f32.gmra.mrb[118].mxu1 %vm692_vm3, %v2428_v19  ;;  %v1449_v39 = vld [vmem:[#allocation5 + $0x200] sm:$0xff] }
 0x59a   :  { %1770 = vst [vmem:[#allocation9 + $0x8] sm:$0xff] %v1642_v40  ;;  %v1522_v47 = vmul.f32 0.001, %v815_v45  ;;  %1330 = vmatprep.mubr.f32.mxu1 %v2261_v11 }
 0x59b   :  { %v1649_v48 = vsub.f32 %v1393_v42, %v1521_v44  ;;  %v1450_v42 = vld [vmem:[#allocation5 + $0x208] sm:$0xff] }
 0x59c   :  { %v1650_v49 = vsub.f32 %v1394_v46, %v1522_v47  ;;  %v819_v50 = vpop.f32.mrb[14].mxu1  ;;  %v1457_v47 = vld [vmem:[#allocation5 + $0x240] sm:$0xff] }
 0x59d   :  { %1777 = vst [vmem:[#allocation9 + $0x40] sm:$0xff] %v1649_v48  ;;  %2023 = vmatmul.mubr.msk.f32.gmra.mrb[120].mxu1 %vm692_vm3, %v2423_v16  ;;  %v1529_v52 = vmul.f32 0.001, %v819_v50  ;;  %v821_v53 = vpop.f32.mrb[15].mxu1  ;;  %v1426_v16 = vld [vmem:[#allocation5 + $0x148] sm:$0xff] }
 0x59e   :  { %1778 = vst [vmem:[#allocation9 + $0x48] sm:$0xff] %v1650_v49  ;;  %v1530_v56 = vmul.f32 0.001, %v821_v53  ;;  %1336 = vmatprep.mubr.f32.mxu1 %v2261_v11  ;;  %v1458_v50 = vld [vmem:[#allocation5 + $0x248] sm:$0xff] }
 0x59f   :  { %v1657_v57 = vsub.f32 %v1401_v51, %v1529_v52 }
 0x5a0   :  { %v1658_v58 = vsub.f32 %v1402_v54, %v1530_v56  ;;  %v825_v59 = vpop.f32.mrb[16].mxu1  ;;  %v1465_v54 = vld [vmem:[#allocation5 + $0x280] sm:$0xff] }
 0x5a1   :  { %1785 = vst [vmem:[#allocation9 + $0x80] sm:$0xff] %v1657_v57  ;;  %v1537_v61 = vmul.f32 0.001, %v825_v59  ;;  %v827_v62 = vpop.f32.mrb[17].mxu1  ;;  %2024 = vmatmul.mubr.msk.f32.gmra.mrb[122].mxu1 %vm692_vm3, %v2439_v22 }
 0x5a2   :  { %1786 = vst [vmem:[#allocation9 + $0x88] sm:$0xff] %v1658_v58  ;;  %v1538_v0 = vmul.f32 0.001, %v827_v62  ;;  %1342 = vmatprep.mubr.f32.mxu1 %v2261_v11  ;;  %v1466_v58 = vld [vmem:[#allocation5 + $0x288] sm:$0xff]  ;;  %v1473_v62 = vld [vmem:[#allocation5 + $0x2c0] sm:$0xff] }
 0x5a3   :  { %v1665_v1 = vsub.f32 %v1409_v60, %v1537_v61 }
 0x5a4   :  { %v1666_v15 = vsub.f32 %v1410_v63, %v1538_v0  ;;  %v831_v2 = vpop.f32.mrb[18].mxu1  ;;  %v1474_v0 = vld [vmem:[#allocation5 + $0x2c8] sm:$0xff] }
 0x5a5   :  { %1793 = vst [vmem:[#allocation9 + $0xc0] sm:$0xff] %v1665_v1  ;;  %2025 = vmatmul.mubr.msk.f32.gmra.mrb[124].mxu1 %vm692_vm3, %v2435_v21  ;;  %v1545_v4 = vmul.f32 0.001, %v831_v2  ;;  %v833_v5 = vpop.f32.mrb[19].mxu1  ;;  %v1433_v21 = vld [vmem:[#allocation5 + $0x180] sm:$0xff] }
 0x5a6   :  { %1794 = vst [vmem:[#allocation9 + $0xc8] sm:$0xff] %v1666_v15  ;;  %v1546_v7 = vmul.f32 0.001, %v833_v5  ;;  %1348 = vmatprep.mubr.f32.mxu1 %v2261_v11 }
 0x5a7   :  { %v1673_v8 = vsub.f32 %v1417_v3, %v1545_v4  ;;  %v1481_v4 = vld [vmem:[#allocation5 + $0x300] sm:$0xff] }
 0x5a8   :  { %v1674_v9 = vsub.f32 %v1418_v6, %v1546_v7  ;;  %v837_v10 = vpop.f32.mrb[20].mxu1  ;;  %v1482_v6 = vld [vmem:[#allocation5 + $0x308] sm:$0xff] }
 0x5a9   :  { %1801 = vst [vmem:[#allocation9 + $0x100] sm:$0xff] %v1673_v8  ;;  %v1553_v13 = vmul.f32 0.001, %v837_v10  ;;  %v839_v14 = vpop.f32.mrb[21].mxu1  ;;  %2026 = vmatmul.mubr.msk.f32.gmra.mrb[126].mxu1 %vm692_vm3, %v2450_v26 }
 0x5aa   :  { %1802 = vst [vmem:[#allocation9 + $0x108] sm:$0xff] %v1674_v9  ;;  %v1554_v17 = vmul.f32 0.001, %v839_v14  ;;  %1354 = vmatprep.mubr.f32.mxu1 %v2261_v11 }
 0x5ab   :  { %v1681_v18 = vsub.f32 %v1425_v12, %v1553_v13  ;;  %v1489_v12 = vld [vmem:[#allocation5 + $0x340] sm:$0xff] }
 0x5ac   :  { %v1682_v19 = vsub.f32 %v1426_v16, %v1554_v17  ;;  %v843_v20 = vpop.f32.mrb[22].mxu1  ;;  %v1490_v16 = vld [vmem:[#allocation5 + $0x348] sm:$0xff] }
 0x5ad   :  { %1809 = vst [vmem:[#allocation9 + $0x140] sm:$0xff] %v1681_v18  ;;  %2027 = vmatmul.mubr.msk.f32.gmra.mrb[128].mxu1 %vm692_vm3, %v2446_v24  ;;  %v1561_v55 = vmul.f32 0.001, %v843_v20  ;;  %v845_v22 = vpop.f32.mrb[23].mxu1 }
 0x5ae   :  { %1810 = vst [vmem:[#allocation9 + $0x148] sm:$0xff] %v1682_v19  ;;  %v1562_v25 = vmul.f32 0.001, %v845_v22  ;;  %1360 = vmatprep.mubr.f32.mxu1 %v2261_v11 }
 0x5af   :  { %v1689_v26 = vsub.f32 %v1433_v21, %v1561_v55  ;;  %v1497_v21 = vld [vmem:[#allocation5 + $0x380] sm:$0xff] }
 0x5b0   :  { %v1690_v31 = vsub.f32 %v1434_v23, %v1562_v25  ;;  %v849_v33 = vpop.f32.mrb[24].mxu1  ;;  %v1498_v23 = vld [vmem:[#allocation5 + $0x388] sm:$0xff] }
 0x5b1   :  { %1817 = vst [vmem:[#allocation9 + $0x180] sm:$0xff] %v1689_v26  ;;  %v1569_v32 = vmul.f32 0.001, %v849_v33  ;;  %v851_v34 = vpop.f32.mrb[25].mxu1  ;;  %2028 = vmatmul.mubr.msk.f32.gmra.mrb[130].mxu1 %vm692_vm3, %v2457_v28 }
 0x5b2   :  { %1818 = vst [vmem:[#allocation9 + $0x188] sm:$0xff] %v1690_v31  ;;  %v1570_v24 = vmul.f32 0.001, %v851_v34  ;;  %1366 = vmatprep.mubr.f32.mxu1 %v2261_v11 }
 0x5b3   :  { %v1697_v36 = vsub.f32 %v1441_v43, %v1569_v32  ;;  %v1505_v43 = vld [vmem:[#allocation5 + $0x3c0] sm:$0xff] }
 0x5b4   :  { %v1698_v37 = vsub.f32 %v1442_v35, %v1570_v24  ;;  %v855_v38 = vpop.f32.mrb[26].mxu1  ;;  %v1506_v35 = vld [vmem:[#allocation5 + $0x3c8] sm:$0xff] }
 0x5b5   :  { %1825 = vst [vmem:[#allocation9 + $0x1c0] sm:$0xff] %v1697_v36  ;;  %2029 = vmatmul.mubr.msk.f32.gmra.mrb[132].mxu1 %vm692_vm3, %v2455_v27  ;;  %v1577_v40 = vmul.f32 0.001, %v855_v38  ;;  %v857_v41 = vpop.f32.mrb[27].mxu1 }
 0x5b6   :  { %1826 = vst [vmem:[#allocation9 + $0x1c8] sm:$0xff] %v1698_v37  ;;  %v1578_v44 = vmul.f32 0.001, %v857_v41  ;;  %1372 = vmatprep.mubr.f32.mxu1 %v2261_v11 }
 0x5b7   :  { %v1705_v28 = vsub.f32 %v1449_v39, %v1577_v40  ;;  %v1387_v39 = vld [vmem:[#allocation5 + $0x10] sm:$0xff] }
 0x5b8   :  { %v1706_v45 = vsub.f32 %v1450_v42, %v1578_v44  ;;  %v861_v46 = vpop.f32.mrb[28].mxu1  ;;  %v1388_v42 = vld [vmem:[#allocation5 + $0x18] sm:$0xff] }
 0x5b9   :  { %1833 = vst [vmem:[#allocation9 + $0x200] sm:$0xff] %v1705_v28  ;;  %v1585_v48 = vmul.f32 0.001, %v861_v46  ;;  %v863_v49 = vpop.f32.mrb[29].mxu1  ;;  %2030 = vmatmul.mubr.msk.f32.gmra.mrb[134].mxu1 %vm692_vm3, %v2464_v30 }
 0x5ba   :  { %1834 = vst [vmem:[#allocation9 + $0x208] sm:$0xff] %v1706_v45  ;;  %v1586_v27 = vmul.f32 0.001, %v863_v49  ;;  %1378 = vmatprep.mubr.f32.mxu1 %v2261_v11 }
 0x5bb   :  { %v1713_v51 = vsub.f32 %v1457_v47, %v1585_v48  ;;  %v1395_v47 = vld [vmem:[#allocation5 + $0x50] sm:$0xff] }
 0x5bc   :  { %v1714_v52 = vsub.f32 %v1458_v50, %v1586_v27  ;;  %v867_v53 = vpop.f32.mrb[30].mxu1  ;;  %v1396_v50 = vld [vmem:[#allocation5 + $0x58] sm:$0xff] }
 0x5bd   :  { %1841 = vst [vmem:[#allocation9 + $0x240] sm:$0xff] %v1713_v51  ;;  %2031 = vmatmul.mubr.msk.f32.gmra.mrb[136].mxu1 %vm692_vm3, %v2462_v29  ;;  %v1593_v56 = vmul.f32 0.001, %v867_v53  ;;  %v869_v57 = vpop.f32.mrb[31].mxu1 }
 0x5be   :  { %1842 = vst [vmem:[#allocation9 + $0x248] sm:$0xff] %v1714_v52  ;;  %v1594_v59 = vmul.f32 0.001, %v869_v57 }
 0x5bf   :  { %v1721_v60 = vsub.f32 %v1465_v54, %v1593_v56  ;;  %v1403_v54 = vld [vmem:[#allocation5 + $0x90] sm:$0xff] }
 0x5c0   :  { %v1722_v61 = vsub.f32 %v1466_v58, %v1594_v59  ;;  %v873_v30 = vpop.f32.mrb[32].mxu1  ;;  %v1404_v58 = vld [vmem:[#allocation5 + $0x98] sm:$0xff] }
 0x5c1   :  { %1849 = vst [vmem:[#allocation9 + $0x280] sm:$0xff] %v1721_v60  ;;  %v1601_v63 = vmul.f32 0.001, %v873_v30  ;;  %v875_v11 = vpop.f32.mrb[33].mxu1 }
 0x5c2   :  { %1850 = vst [vmem:[#allocation9 + $0x288] sm:$0xff] %v1722_v61  ;;  %v1602_v1 = vmul.f32 0.001, %v875_v11 }
 0x5c3   :  { %v1729_v15 = vsub.f32 %v1473_v62, %v1601_v63  ;;  %v1411_v62 = vld [vmem:[#allocation5 + $0xd0] sm:$0xff] }
 0x5c4   :  { %v1730_v2 = vsub.f32 %v1474_v0, %v1602_v1  ;;  %v879_v3 = vpop.f32.mrb[34].mxu1  ;;  %v1412_v0 = vld [vmem:[#allocation5 + $0xd8] sm:$0xff] }
 0x5c5   :  { %1857 = vst [vmem:[#allocation9 + $0x2c0] sm:$0xff] %v1729_v15  ;;  %v1609_v29 = vmul.f32 0.001, %v879_v3  ;;  %v881_v5 = vpop.f32.mrb[35].mxu1 }
 0x5c6   :  { %1858 = vst [vmem:[#allocation9 + $0x2c8] sm:$0xff] %v1730_v2  ;;  %v1610_v7 = vmul.f32 0.001, %v881_v5 }
 0x5c7   :  { %v1737_v8 = vsub.f32 %v1481_v4, %v1609_v29  ;;  %v1419_v4 = vld [vmem:[#allocation5 + $0x110] sm:$0xff] }
 0x5c8   :  { %v1738_v9 = vsub.f32 %v1482_v6, %v1610_v7  ;;  %v885_v10 = vpop.f32.mrb[36].mxu1  ;;  %v1420_v6 = vld [vmem:[#allocation5 + $0x118] sm:$0xff] }
 0x5c9   :  { %1865 = vst [vmem:[#allocation9 + $0x300] sm:$0xff] %v1737_v8  ;;  %v1617_v13 = vmul.f32 0.001, %v885_v10  ;;  %v887_v14 = vpop.f32.mrb[37].mxu1 }
 0x5ca   :  { %1866 = vst [vmem:[#allocation9 + $0x308] sm:$0xff] %v1738_v9  ;;  %v1618_v17 = vmul.f32 0.001, %v887_v14 }
 0x5cb   :  { %v1745_v18 = vsub.f32 %v1489_v12, %v1617_v13  ;;  %v1427_v12 = vld [vmem:[#allocation5 + $0x150] sm:$0xff] }
 0x5cc   :  { %v1746_v19 = vsub.f32 %v1490_v16, %v1618_v17  ;;  %v891_v20 = vpop.f32.mrb[38].mxu1  ;;  %v1428_v16 = vld [vmem:[#allocation5 + $0x158] sm:$0xff] }
 0x5cd   :  { %1873 = vst [vmem:[#allocation9 + $0x340] sm:$0xff] %v1745_v18  ;;  %v1625_v55 = vmul.f32 0.001, %v891_v20  ;;  %v893_v22 = vpop.f32.mrb[39].mxu1 }
 0x5ce   :  { %1874 = vst [vmem:[#allocation9 + $0x348] sm:$0xff] %v1746_v19  ;;  %v1626_v25 = vmul.f32 0.001, %v893_v22 }
 0x5cf   :  { %v1753_v26 = vsub.f32 %v1497_v21, %v1625_v55  ;;  %v1435_v21 = vld [vmem:[#allocation5 + $0x190] sm:$0xff] }
 0x5d0   :  { %v1754_v31 = vsub.f32 %v1498_v23, %v1626_v25  ;;  %v897_v33 = vpop.f32.mrb[40].mxu1  ;;  %v1436_v23 = vld [vmem:[#allocation5 + $0x198] sm:$0xff] }
 0x5d1   :  { %1881 = vst [vmem:[#allocation9 + $0x380] sm:$0xff] %v1753_v26  ;;  %v1633_v32 = vmul.f32 0.001, %v897_v33  ;;  %v899_v34 = vpop.f32.mrb[41].mxu1 }
 0x5d2   :  { %1882 = vst [vmem:[#allocation9 + $0x388] sm:$0xff] %v1754_v31  ;;  %v1634_v24 = vmul.f32 0.001, %v899_v34 }
 0x5d3   :  { %v1761_v36 = vsub.f32 %v1505_v43, %v1633_v32  ;;  %v1443_v43 = vld [vmem:[#allocation5 + $0x1d0] sm:$0xff] }
 0x5d4   :  { %v1762_v37 = vsub.f32 %v1506_v35, %v1634_v24  ;;  %v968_v38 = vpop.f32.mrb[42].mxu1  ;;  %v1444_v35 = vld [vmem:[#allocation5 + $0x1d8] sm:$0xff] }
 0x5d5   :  { %1889 = vst [vmem:[#allocation9 + $0x3c0] sm:$0xff] %v1761_v36  ;;  %v1515_v40 = vmul.f32 0.001, %v968_v38  ;;  %v970_v41 = vpop.f32.mrb[43].mxu1 }
 0x5d6   :  { %1890 = vst [vmem:[#allocation9 + $0x3c8] sm:$0xff] %v1762_v37  ;;  %v1516_v44 = vmul.f32 0.001, %v970_v41 }
 0x5d7   :  { %v1643_v28 = vsub.f32 %v1387_v39, %v1515_v40  ;;  %v1451_v39 = vld [vmem:[#allocation5 + $0x210] sm:$0xff] }
 0x5d8   :  { %v1644_v45 = vsub.f32 %v1388_v42, %v1516_v44  ;;  %v974_v46 = vpop.f32.mrb[44].mxu1  ;;  %v1452_v42 = vld [vmem:[#allocation5 + $0x218] sm:$0xff] }
 0x5d9   :  { %1771 = vst [vmem:[#allocation9 + $0x10] sm:$0xff] %v1643_v28  ;;  %v1523_v48 = vmul.f32 0.001, %v974_v46  ;;  %v976_v49 = vpop.f32.mrb[45].mxu1 }
 0x5da   :  { %1772 = vst [vmem:[#allocation9 + $0x18] sm:$0xff] %v1644_v45  ;;  %v1524_v27 = vmul.f32 0.001, %v976_v49 }
 0x5db   :  { %v1651_v51 = vsub.f32 %v1395_v47, %v1523_v48  ;;  %v1459_v47 = vld [vmem:[#allocation5 + $0x250] sm:$0xff] }
 0x5dc   :  { %v1652_v52 = vsub.f32 %v1396_v50, %v1524_v27  ;;  %v980_v53 = vpop.f32.mrb[46].mxu1  ;;  %v1460_v50 = vld [vmem:[#allocation5 + $0x258] sm:$0xff] }
 0x5dd   :  { %1779 = vst [vmem:[#allocation9 + $0x50] sm:$0xff] %v1651_v51  ;;  %v1531_v56 = vmul.f32 0.001, %v980_v53  ;;  %v982_v57 = vpop.f32.mrb[47].mxu1 }
 0x5de   :  { %1780 = vst [vmem:[#allocation9 + $0x58] sm:$0xff] %v1652_v52  ;;  %v1532_v59 = vmul.f32 0.001, %v982_v57 }
 0x5df   :  { %v1659_v60 = vsub.f32 %v1403_v54, %v1531_v56  ;;  %v1467_v54 = vld [vmem:[#allocation5 + $0x290] sm:$0xff] }
 0x5e0   :  { %v1660_v61 = vsub.f32 %v1404_v58, %v1532_v59  ;;  %v986_v30 = vpop.f32.mrb[48].mxu1  ;;  %v1468_v58 = vld [vmem:[#allocation5 + $0x298] sm:$0xff] }
 0x5e1   :  { %1787 = vst [vmem:[#allocation9 + $0x90] sm:$0xff] %v1659_v60  ;;  %v1539_v63 = vmul.f32 0.001, %v986_v30  ;;  %v988_v11 = vpop.f32.mrb[49].mxu1 }
 0x5e2   :  { %1788 = vst [vmem:[#allocation9 + $0x98] sm:$0xff] %v1660_v61  ;;  %v1540_v1 = vmul.f32 0.001, %v988_v11 }
 0x5e3   :  { %v1667_v15 = vsub.f32 %v1411_v62, %v1539_v63  ;;  %v1475_v62 = vld [vmem:[#allocation5 + $0x2d0] sm:$0xff] }
 0x5e4   :  { %v1668_v2 = vsub.f32 %v1412_v0, %v1540_v1  ;;  %v992_v3 = vpop.f32.mrb[50].mxu1  ;;  %v1476_v0 = vld [vmem:[#allocation5 + $0x2d8] sm:$0xff] }
 0x5e5   :  { %1795 = vst [vmem:[#allocation9 + $0xd0] sm:$0xff] %v1667_v15  ;;  %v1547_v29 = vmul.f32 0.001, %v992_v3  ;;  %v994_v5 = vpop.f32.mrb[51].mxu1 }
 0x5e6   :  { %1796 = vst [vmem:[#allocation9 + $0xd8] sm:$0xff] %v1668_v2  ;;  %v1548_v7 = vmul.f32 0.001, %v994_v5 }
 0x5e7   :  { %v1675_v8 = vsub.f32 %v1419_v4, %v1547_v29  ;;  %v1483_v4 = vld [vmem:[#allocation5 + $0x310] sm:$0xff] }
 0x5e8   :  { %v1676_v9 = vsub.f32 %v1420_v6, %v1548_v7  ;;  %v998_v10 = vpop.f32.mrb[52].mxu1  ;;  %v1484_v6 = vld [vmem:[#allocation5 + $0x318] sm:$0xff] }
 0x5e9   :  { %1803 = vst [vmem:[#allocation9 + $0x110] sm:$0xff] %v1675_v8  ;;  %v1555_v13 = vmul.f32 0.001, %v998_v10  ;;  %v1000_v14 = vpop.f32.mrb[53].mxu1 }
 0x5ea   :  { %1804 = vst [vmem:[#allocation9 + $0x118] sm:$0xff] %v1676_v9  ;;  %v1556_v17 = vmul.f32 0.001, %v1000_v14 }
 0x5eb   :  { %v1683_v18 = vsub.f32 %v1427_v12, %v1555_v13  ;;  %v1491_v12 = vld [vmem:[#allocation5 + $0x350] sm:$0xff] }
 0x5ec   :  { %v1684_v19 = vsub.f32 %v1428_v16, %v1556_v17  ;;  %v1004_v20 = vpop.f32.mrb[54].mxu1  ;;  %v1492_v16 = vld [vmem:[#allocation5 + $0x358] sm:$0xff] }
 0x5ed   :  { %1811 = vst [vmem:[#allocation9 + $0x150] sm:$0xff] %v1683_v18  ;;  %v1563_v55 = vmul.f32 0.001, %v1004_v20  ;;  %v1006_v22 = vpop.f32.mrb[55].mxu1 }
 0x5ee   :  { %1812 = vst [vmem:[#allocation9 + $0x158] sm:$0xff] %v1684_v19  ;;  %v1564_v25 = vmul.f32 0.001, %v1006_v22 }
 0x5ef   :  { %v1691_v26 = vsub.f32 %v1435_v21, %v1563_v55  ;;  %v1499_v21 = vld [vmem:[#allocation5 + $0x390] sm:$0xff] }
 0x5f0   :  { %v1692_v31 = vsub.f32 %v1436_v23, %v1564_v25  ;;  %v1010_v33 = vpop.f32.mrb[56].mxu1  ;;  %v1500_v23 = vld [vmem:[#allocation5 + $0x398] sm:$0xff] }
 0x5f1   :  { %1819 = vst [vmem:[#allocation9 + $0x190] sm:$0xff] %v1691_v26  ;;  %v1571_v32 = vmul.f32 0.001, %v1010_v33  ;;  %v1012_v34 = vpop.f32.mrb[57].mxu1 }
 0x5f2   :  { %1820 = vst [vmem:[#allocation9 + $0x198] sm:$0xff] %v1692_v31  ;;  %v1572_v24 = vmul.f32 0.001, %v1012_v34 }
 0x5f3   :  { %v1699_v36 = vsub.f32 %v1443_v43, %v1571_v32  ;;  %v1507_v43 = vld [vmem:[#allocation5 + $0x3d0] sm:$0xff] }
 0x5f4   :  { %v1700_v37 = vsub.f32 %v1444_v35, %v1572_v24  ;;  %v1016_v38 = vpop.f32.mrb[58].mxu1  ;;  %v1508_v35 = vld [vmem:[#allocation5 + $0x3d8] sm:$0xff] }
 0x5f5   :  { %1827 = vst [vmem:[#allocation9 + $0x1d0] sm:$0xff] %v1699_v36  ;;  %v1579_v40 = vmul.f32 0.001, %v1016_v38  ;;  %v1018_v41 = vpop.f32.mrb[59].mxu1 }
 0x5f6   :  { %1828 = vst [vmem:[#allocation9 + $0x1d8] sm:$0xff] %v1700_v37  ;;  %v1580_v44 = vmul.f32 0.001, %v1018_v41 }
 0x5f7   :  { %v1707_v28 = vsub.f32 %v1451_v39, %v1579_v40  ;;  %v1389_v39 = vld [vmem:[#allocation5 + $0x20] sm:$0xff] }
 0x5f8   :  { %v1708_v45 = vsub.f32 %v1452_v42, %v1580_v44  ;;  %v1022_v46 = vpop.f32.mrb[60].mxu1  ;;  %v1390_v42 = vld [vmem:[#allocation5 + $0x28] sm:$0xff] }
 0x5f9   :  { %1835 = vst [vmem:[#allocation9 + $0x210] sm:$0xff] %v1707_v28  ;;  %v1587_v48 = vmul.f32 0.001, %v1022_v46  ;;  %v1024_v49 = vpop.f32.mrb[61].mxu1 }
 0x5fa   :  { %1836 = vst [vmem:[#allocation9 + $0x218] sm:$0xff] %v1708_v45  ;;  %v1588_v27 = vmul.f32 0.001, %v1024_v49 }
 0x5fb   :  { %v1715_v51 = vsub.f32 %v1459_v47, %v1587_v48  ;;  %v1397_v47 = vld [vmem:[#allocation5 + $0x60] sm:$0xff] }
 0x5fc   :  { %v1716_v52 = vsub.f32 %v1460_v50, %v1588_v27  ;;  %v1028_v53 = vpop.f32.mrb[62].mxu1 }
 0x5fd   :  { %1843 = vst [vmem:[#allocation9 + $0x250] sm:$0xff] %v1715_v51  ;;  %v1595_v56 = vmul.f32 0.001, %v1028_v53  ;;  %v1030_v57 = vpop.f32.mrb[63].mxu1 }
 0x5fe   :  { %1844 = vst [vmem:[#allocation9 + $0x258] sm:$0xff] %v1716_v52  ;;  %v1596_v59 = vmul.f32 0.001, %v1030_v57 }
 0x5ff   :  { %v1723_v60 = vsub.f32 %v1467_v54, %v1595_v56 }
 0x600   :  { %v1724_v61 = vsub.f32 %v1468_v58, %v1596_v59  ;;  %v1034_v30 = vpop.f32.mrb[64].mxu1 }
 0x601   :  { %1851 = vst [vmem:[#allocation9 + $0x290] sm:$0xff] %v1723_v60  ;;  %v1603_v63 = vmul.f32 0.001, %v1034_v30  ;;  %v1036_v11 = vpop.f32.mrb[65].mxu1 }
 0x602   :  { %1852 = vst [vmem:[#allocation9 + $0x298] sm:$0xff] %v1724_v61  ;;  %v1604_v1 = vmul.f32 0.001, %v1036_v11 }
 0x603   :  { %v1731_v15 = vsub.f32 %v1475_v62, %v1603_v63 }
 0x604   :  { %v1732_v2 = vsub.f32 %v1476_v0, %v1604_v1  ;;  %v1040_v3 = vpop.f32.mrb[66].mxu1 }
 0x605   :  { %1859 = vst [vmem:[#allocation9 + $0x2d0] sm:$0xff] %v1731_v15  ;;  %v1611_v29 = vmul.f32 0.001, %v1040_v3  ;;  %v1042_v5 = vpop.f32.mrb[67].mxu1 }
 0x606   :  { %1860 = vst [vmem:[#allocation9 + $0x2d8] sm:$0xff] %v1732_v2  ;;  %v1612_v7 = vmul.f32 0.001, %v1042_v5 }
 0x607   :  { %v1739_v8 = vsub.f32 %v1483_v4, %v1611_v29 }
 0x608   :  { %v1740_v9 = vsub.f32 %v1484_v6, %v1612_v7  ;;  %v1046_v10 = vpop.f32.mrb[68].mxu1 }
 0x609   :  { %1867 = vst [vmem:[#allocation9 + $0x310] sm:$0xff] %v1739_v8  ;;  %v1619_v13 = vmul.f32 0.001, %v1046_v10  ;;  %v1048_v14 = vpop.f32.mrb[69].mxu1 }
 0x60a   :  { %1868 = vst [vmem:[#allocation9 + $0x318] sm:$0xff] %v1740_v9  ;;  %v1620_v17 = vmul.f32 0.001, %v1048_v14 }
 0x60b   :  { %v1747_v18 = vsub.f32 %v1491_v12, %v1619_v13 }
 0x60c   :  { %v1748_v19 = vsub.f32 %v1492_v16, %v1620_v17  ;;  %v1052_v20 = vpop.f32.mrb[70].mxu1 }
 0x60d   :  { %1875 = vst [vmem:[#allocation9 + $0x350] sm:$0xff] %v1747_v18  ;;  %v1627_v55 = vmul.f32 0.001, %v1052_v20  ;;  %v1054_v22 = vpop.f32.mrb[71].mxu1 }
 0x60e   :  { %1876 = vst [vmem:[#allocation9 + $0x358] sm:$0xff] %v1748_v19  ;;  %v1628_v25 = vmul.f32 0.001, %v1054_v22 }
 0x60f   :  { %v1755_v26 = vsub.f32 %v1499_v21, %v1627_v55 }
 0x610   :  { %v1756_v31 = vsub.f32 %v1500_v23, %v1628_v25  ;;  %v1058_v33 = vpop.f32.mrb[72].mxu1 }
 0x611   :  { %1883 = vst [vmem:[#allocation9 + $0x390] sm:$0xff] %v1755_v26  ;;  %v1635_v32 = vmul.f32 0.001, %v1058_v33  ;;  %v1060_v34 = vpop.f32.mrb[73].mxu1 }
 0x612   :  { %1884 = vst [vmem:[#allocation9 + $0x398] sm:$0xff] %v1756_v31  ;;  %v1636_v24 = vmul.f32 0.001, %v1060_v34 }
 0x613   :  { %v1763_v36 = vsub.f32 %v1507_v43, %v1635_v32 }
 0x614   :  { %v1764_v37 = vsub.f32 %v1508_v35, %v1636_v24  ;;  %v1129_v38 = vpop.f32.mrb[74].mxu1 }
 0x615   :  { %1891 = vst [vmem:[#allocation9 + $0x3d0] sm:$0xff] %v1763_v36  ;;  %v1517_v40 = vmul.f32 0.001, %v1129_v38  ;;  %v1131_v41 = vpop.f32.mrb[75].mxu1 }
 0x616   :  { %1892 = vst [vmem:[#allocation9 + $0x3d8] sm:$0xff] %v1764_v37  ;;  %v1518_v44 = vmul.f32 0.001, %v1131_v41 }
 0x617   :  { %v1645_v28 = vsub.f32 %v1389_v39, %v1517_v40 }
 0x618   :  { %v1646_v45 = vsub.f32 %v1390_v42, %v1518_v44  ;;  %v1135_v46 = vpop.f32.mrb[76].mxu1 }
 0x619   :  { %2192 = shalt.err (!%p2189_p0)
}
 0x61a   :  { %s2193_s11 = scalar_lea.hbm %s2690_s3, 128 }
 0x61b   :  { %p2194_p1 = scmp.ne.s32.totalorder %s2690_s3, %s2193_s11  ;;  %p2197_p2 = scmp.lt.u32.totalorder %s2193_s11, %s2690_s3 }
 0x61d   :  { %p2199_p3 = pnand %p2197_p2, %p2194_p1 }
 0x61f   :  { %2202 = shalt.err (!%p2199_p3)
}
 0x620   :  { %1906 = dma.vmem_to_hbm [thread:$0]  %s1904_s7, 128, %s2690_s3, [#allocation4]   ;;  %1773 = vst [vmem:[#allocation9 + $0x20] sm:$0xff] %v1645_v28  ;;  %v1525_v48 = vmul.f32 0.001, %v1135_v46  ;;  %v1137_v49 = vpop.f32.mrb[77].mxu1 }
 0x621   :  { %v1398_v50 = vld [vmem:[#allocation5 + $0x68] sm:$0xff]  ;;  %1774 = vst [vmem:[#allocation9 + $0x28] sm:$0xff] %v1646_v45  ;;  %v1526_v27 = vmul.f32 0.001, %v1137_v49  ;;  %v1141_v53 = vpop.f32.mrb[78].mxu1  ;;  %v1405_v54 = vld [vmem:[#allocation5 + $0xa0] sm:$0xff] }
 0x622   :  { %v1653_v51 = vsub.f32 %v1397_v47, %v1525_v48  ;;  %v1533_v56 = vmul.f32 0.001, %v1141_v53  ;;  %v1143_v57 = vpop.f32.mrb[79].mxu1  ;;  %v1406_v58 = vld [vmem:[#allocation5 + $0xa8] sm:$0xff]  ;;  %v1413_v62 = vld [vmem:[#allocation5 + $0xe0] sm:$0xff]  ;;  %s2263_s3 = smov [#allocation9]  }
 0x623   :  { %v1654_v52 = vsub.f32 %v1398_v50, %v1526_v27  ;;  %v1534_v59 = vmul.f32 0.001, %v1143_v57  ;;  %v1147_v30 = vpop.f32.mrb[80].mxu1  ;;  %v1414_v0 = vld [vmem:[#allocation5 + $0xe8] sm:$0xff]  ;;  %v1421_v4 = vld [vmem:[#allocation5 + $0x120] sm:$0xff]  ;;  %s1912_s1 = sshll.u32 %s2263_s3, 4  ;;  %s1913_s1 = int_to_ptr.vmem [resolvable:$true] %s1912_s1 }
 0x624   :  { %1781 = vst [vmem:[#allocation9 + $0x60] sm:$0xff] %v1653_v51  ;;  %v1661_v60 = vsub.f32 %v1405_v54, %v1533_v56  ;;  %v1541_v63 = vmul.f32 0.001, %v1147_v30  ;;  %v1149_v11 = vpop.f32.mrb[81].mxu1  ;;  %v1422_v6 = vld [vmem:[#allocation5 + $0x128] sm:$0xff]  ;;  %v1429_v12 = vld [vmem:[#allocation5 + $0x160] sm:$0xff]  ;;  %p2208_p5 = scmp.lt.s32.totalorder %s1913_s1, %s1913_s1 }
 0x625   :  { %1782 = vst [vmem:[#allocation9 + $0x68] sm:$0xff] %v1654_v52  ;;  %v1662_v61 = vsub.f32 %v1406_v58, %v1534_v59  ;;  %v1542_v1 = vmul.f32 0.001, %v1149_v11  ;;  %v1153_v3 = vpop.f32.mrb[82].mxu1  ;;  %v1430_v16 = vld [vmem:[#allocation5 + $0x168] sm:$0xff]  ;;  %v1437_v21 = vld [vmem:[#allocation5 + $0x1a0] sm:$0xff] }
 0x626   :  { %1789 = vst [vmem:[#allocation9 + $0xa0] sm:$0xff] %v1661_v60  ;;  %v1669_v15 = vsub.f32 %v1413_v62, %v1541_v63  ;;  %v1549_v29 = vmul.f32 0.001, %v1153_v3  ;;  %v1155_v5 = vpop.f32.mrb[83].mxu1  ;;  %v1438_v23 = vld [vmem:[#allocation5 + $0x1a8] sm:$0xff]  ;;  %v1445_v43 = vld [vmem:[#allocation5 + $0x1e0] sm:$0xff] }
 0x627   :  { %1790 = vst [vmem:[#allocation9 + $0xa8] sm:$0xff] %v1662_v61  ;;  %v1670_v2 = vsub.f32 %v1414_v0, %v1542_v1  ;;  %v1550_v7 = vmul.f32 0.001, %v1155_v5  ;;  %v1446_v35 = vld [vmem:[#allocation5 + $0x1e8] sm:$0xff]  ;;  %v1453_v39 = vld [vmem:[#allocation5 + $0x220] sm:$0xff]  ;;  %s2264_s18 = smov [#allocation11]  }
 0x628   :  { %1797 = vst [vmem:[#allocation9 + $0xe0] sm:$0xff] %v1669_v15  ;;  %v1677_v8 = vsub.f32 %v1421_v4, %v1549_v29  ;;  %v1159_v10 = vpop.f32.mrb[84].mxu1  ;;  %v1454_v42 = vld [vmem:[#allocation5 + $0x228] sm:$0xff]  ;;  %v1461_v47 = vld [vmem:[#allocation5 + $0x260] sm:$0xff]  ;;  %s1925_s19 = sshll.u32 %s2264_s18, 4  ;;  %s2203_s20 = scalar_lea.vmem %s1913_s1, 16384  ;;  %s1926_s19 = int_to_ptr.vmem [resolvable:$true] %s1925_s19 }
 0x629   :  { %1798 = vst [vmem:[#allocation9 + $0xe8] sm:$0xff] %v1670_v2  ;;  %v1678_v9 = vsub.f32 %v1422_v6, %v1550_v7  ;;  %v1557_v13 = vmul.f32 0.001, %v1159_v10  ;;  %v1161_v14 = vpop.f32.mrb[85].mxu1  ;;  %v1462_v50 = vld [vmem:[#allocation5 + $0x268] sm:$0xff]  ;;  %v1469_v54 = vld [vmem:[#allocation5 + $0x2a0] sm:$0xff]  ;;  %p2204_p4 = scmp.ne.s32.totalorder %s1913_s1, %s2203_s20  ;;  %p2209_p6 = scmp.lt.s32.totalorder %s2203_s20, %s2203_s20 }
 0x62a   :  { %1805 = vst [vmem:[#allocation9 + $0x120] sm:$0xff] %v1677_v8  ;;  %v1558_v17 = vmul.f32 0.001, %v1161_v14  ;;  %v1470_v58 = vld [vmem:[#allocation5 + $0x2a8] sm:$0xff]  ;;  %v1477_v62 = vld [vmem:[#allocation5 + $0x2e0] sm:$0xff] }
 0x62b   :  { %1806 = vst [vmem:[#allocation9 + $0x128] sm:$0xff] %v1678_v9  ;;  %v1685_v18 = vsub.f32 %v1429_v12, %v1557_v13  ;;  %v1478_v0 = vld [vmem:[#allocation5 + $0x2e8] sm:$0xff]  ;;  %v1485_v4 = vld [vmem:[#allocation5 + $0x320] sm:$0xff]  ;;  %p2210_p7 = por %p2209_p6, %p2208_p5 }
 0x62c   :  { %v1686_v19 = vsub.f32 %v1430_v16, %v1558_v17  ;;  %v1165_v20 = vpop.f32.mrb[86].mxu1  ;;  %v1486_v6 = vld [vmem:[#allocation5 + $0x328] sm:$0xff]  ;;  %v1493_v12 = vld [vmem:[#allocation5 + $0x360] sm:$0xff] }
 0x62d   :  { %1813 = vst [vmem:[#allocation9 + $0x160] sm:$0xff] %v1685_v18  ;;  %v1565_v55 = vmul.f32 0.001, %v1165_v20  ;;  %v1167_v22 = vpop.f32.mrb[87].mxu1  ;;  %v1494_v16 = vld [vmem:[#allocation5 + $0x368] sm:$0xff]  ;;  %p2211_p8 = pnand %p2210_p7, %p2204_p4 }
 0x62e   :  { %1814 = vst [vmem:[#allocation9 + $0x168] sm:$0xff] %v1686_v19  ;;  %v1566_v25 = vmul.f32 0.001, %v1167_v22 }
 0x62f   :  { %v1693_v26 = vsub.f32 %v1437_v21, %v1565_v55  ;;  %v1501_v21 = vld [vmem:[#allocation5 + $0x3a0] sm:$0xff] }
 0x630   :  { %v1694_v31 = vsub.f32 %v1438_v23, %v1566_v25  ;;  %v1171_v33 = vpop.f32.mrb[88].mxu1  ;;  %v1502_v23 = vld [vmem:[#allocation5 + $0x3a8] sm:$0xff] }
 0x631   :  { %1821 = vst [vmem:[#allocation9 + $0x1a0] sm:$0xff] %v1693_v26  ;;  %v1573_v32 = vmul.f32 0.001, %v1171_v33  ;;  %v1173_v34 = vpop.f32.mrb[89].mxu1 }
 0x632   :  { %1822 = vst [vmem:[#allocation9 + $0x1a8] sm:$0xff] %v1694_v31  ;;  %v1574_v24 = vmul.f32 0.001, %v1173_v34 }
 0x633   :  { %v1701_v36 = vsub.f32 %v1445_v43, %v1573_v32  ;;  %v1509_v43 = vld [vmem:[#allocation5 + $0x3e0] sm:$0xff] }
 0x634   :  { %v1702_v37 = vsub.f32 %v1446_v35, %v1574_v24  ;;  %v1177_v38 = vpop.f32.mrb[90].mxu1  ;;  %v1510_v35 = vld [vmem:[#allocation5 + $0x3e8] sm:$0xff] }
 0x635   :  { %1829 = vst [vmem:[#allocation9 + $0x1e0] sm:$0xff] %v1701_v36  ;;  %v1581_v40 = vmul.f32 0.001, %v1177_v38  ;;  %v1179_v41 = vpop.f32.mrb[91].mxu1 }
 0x636   :  { %1830 = vst [vmem:[#allocation9 + $0x1e8] sm:$0xff] %v1702_v37  ;;  %v1582_v44 = vmul.f32 0.001, %v1179_v41 }
 0x637   :  { %v1709_v28 = vsub.f32 %v1453_v39, %v1581_v40  ;;  %v1391_v39 = vld [vmem:[#allocation5 + $0x30] sm:$0xff] }
 0x638   :  { %v1710_v45 = vsub.f32 %v1454_v42, %v1582_v44  ;;  %v1183_v46 = vpop.f32.mrb[92].mxu1  ;;  %v1392_v42 = vld [vmem:[#allocation5 + $0x38] sm:$0xff] }
 0x639   :  { %1837 = vst [vmem:[#allocation9 + $0x220] sm:$0xff] %v1709_v28  ;;  %v1589_v48 = vmul.f32 0.001, %v1183_v46  ;;  %v1185_v49 = vpop.f32.mrb[93].mxu1 }
 0x63a   :  { %1838 = vst [vmem:[#allocation9 + $0x228] sm:$0xff] %v1710_v45  ;;  %v1590_v27 = vmul.f32 0.001, %v1185_v49 }
 0x63b   :  { %v1717_v51 = vsub.f32 %v1461_v47, %v1589_v48  ;;  %v1399_v47 = vld [vmem:[#allocation5 + $0x70] sm:$0xff] }
 0x63c   :  { %v1718_v52 = vsub.f32 %v1462_v50, %v1590_v27  ;;  %v1189_v53 = vpop.f32.mrb[94].mxu1  ;;  %v1400_v50 = vld [vmem:[#allocation5 + $0x78] sm:$0xff] }
 0x63d   :  { %1845 = vst [vmem:[#allocation9 + $0x260] sm:$0xff] %v1717_v51  ;;  %v1597_v56 = vmul.f32 0.001, %v1189_v53  ;;  %v1191_v57 = vpop.f32.mrb[95].mxu1 }
 0x63e   :  { %1846 = vst [vmem:[#allocation9 + $0x268] sm:$0xff] %v1718_v52  ;;  %v1598_v59 = vmul.f32 0.001, %v1191_v57 }
 0x63f   :  { %v1725_v60 = vsub.f32 %v1469_v54, %v1597_v56  ;;  %v1407_v54 = vld [vmem:[#allocation5 + $0xb0] sm:$0xff] }
 0x640   :  { %v1726_v61 = vsub.f32 %v1470_v58, %v1598_v59  ;;  %v1195_v30 = vpop.f32.mrb[96].mxu1  ;;  %v1408_v58 = vld [vmem:[#allocation5 + $0xb8] sm:$0xff] }
 0x641   :  { %1853 = vst [vmem:[#allocation9 + $0x2a0] sm:$0xff] %v1725_v60  ;;  %v1605_v63 = vmul.f32 0.001, %v1195_v30  ;;  %v1197_v11 = vpop.f32.mrb[97].mxu1 }
 0x642   :  { %1854 = vst [vmem:[#allocation9 + $0x2a8] sm:$0xff] %v1726_v61  ;;  %v1606_v1 = vmul.f32 0.001, %v1197_v11 }
 0x643   :  { %v1733_v15 = vsub.f32 %v1477_v62, %v1605_v63  ;;  %v1415_v62 = vld [vmem:[#allocation5 + $0xf0] sm:$0xff] }
 0x644   :  { %v1734_v2 = vsub.f32 %v1478_v0, %v1606_v1  ;;  %v1201_v3 = vpop.f32.mrb[98].mxu1  ;;  %v1416_v0 = vld [vmem:[#allocation5 + $0xf8] sm:$0xff] }
 0x645   :  { %1861 = vst [vmem:[#allocation9 + $0x2e0] sm:$0xff] %v1733_v15  ;;  %v1613_v29 = vmul.f32 0.001, %v1201_v3  ;;  %v1203_v5 = vpop.f32.mrb[99].mxu1 }
 0x646   :  { %1862 = vst [vmem:[#allocation9 + $0x2e8] sm:$0xff] %v1734_v2  ;;  %v1614_v7 = vmul.f32 0.001, %v1203_v5 }
 0x647   :  { %v1741_v8 = vsub.f32 %v1485_v4, %v1613_v29  ;;  %v1423_v4 = vld [vmem:[#allocation5 + $0x130] sm:$0xff] }
 0x648   :  { %v1742_v9 = vsub.f32 %v1486_v6, %v1614_v7  ;;  %v1207_v10 = vpop.f32.mrb[100].mxu1  ;;  %v1424_v6 = vld [vmem:[#allocation5 + $0x138] sm:$0xff] }
 0x649   :  { %1869 = vst [vmem:[#allocation9 + $0x320] sm:$0xff] %v1741_v8  ;;  %v1621_v13 = vmul.f32 0.001, %v1207_v10  ;;  %v1209_v14 = vpop.f32.mrb[101].mxu1 }
 0x64a   :  { %1870 = vst [vmem:[#allocation9 + $0x328] sm:$0xff] %v1742_v9  ;;  %v1622_v17 = vmul.f32 0.001, %v1209_v14 }
 0x64b   :  { %v1749_v18 = vsub.f32 %v1493_v12, %v1621_v13  ;;  %v1431_v12 = vld [vmem:[#allocation5 + $0x170] sm:$0xff] }
 0x64c   :  { %v1750_v19 = vsub.f32 %v1494_v16, %v1622_v17  ;;  %v1213_v20 = vpop.f32.mrb[102].mxu1  ;;  %v1432_v16 = vld [vmem:[#allocation5 + $0x178] sm:$0xff] }
 0x64d   :  { %1877 = vst [vmem:[#allocation9 + $0x360] sm:$0xff] %v1749_v18  ;;  %v1629_v55 = vmul.f32 0.001, %v1213_v20  ;;  %v1215_v22 = vpop.f32.mrb[103].mxu1 }
 0x64e   :  { %1878 = vst [vmem:[#allocation9 + $0x368] sm:$0xff] %v1750_v19  ;;  %v1630_v25 = vmul.f32 0.001, %v1215_v22 }
 0x64f   :  { %v1757_v26 = vsub.f32 %v1501_v21, %v1629_v55  ;;  %v1439_v21 = vld [vmem:[#allocation5 + $0x1b0] sm:$0xff] }
 0x650   :  { %v1758_v31 = vsub.f32 %v1502_v23, %v1630_v25  ;;  %v1219_v33 = vpop.f32.mrb[104].mxu1  ;;  %v1440_v23 = vld [vmem:[#allocation5 + $0x1b8] sm:$0xff] }
 0x651   :  { %1885 = vst [vmem:[#allocation9 + $0x3a0] sm:$0xff] %v1757_v26  ;;  %v1637_v32 = vmul.f32 0.001, %v1219_v33  ;;  %v1221_v34 = vpop.f32.mrb[105].mxu1 }
 0x652   :  { %1886 = vst [vmem:[#allocation9 + $0x3a8] sm:$0xff] %v1758_v31  ;;  %v1638_v24 = vmul.f32 0.001, %v1221_v34 }
 0x653   :  { %v1765_v36 = vsub.f32 %v1509_v43, %v1637_v32  ;;  %v1447_v43 = vld [vmem:[#allocation5 + $0x1f0] sm:$0xff] }
 0x654   :  { %v1766_v37 = vsub.f32 %v1510_v35, %v1638_v24  ;;  %v1290_v38 = vpop.f32.mrb[106].mxu1  ;;  %v1448_v35 = vld [vmem:[#allocation5 + $0x1f8] sm:$0xff] }
 0x655   :  { %1893 = vst [vmem:[#allocation9 + $0x3e0] sm:$0xff] %v1765_v36  ;;  %v1519_v40 = vmul.f32 0.001, %v1290_v38  ;;  %v1292_v41 = vpop.f32.mrb[107].mxu1 }
 0x656   :  { %1894 = vst [vmem:[#allocation9 + $0x3e8] sm:$0xff] %v1766_v37  ;;  %v1520_v44 = vmul.f32 0.001, %v1292_v41 }
 0x657   :  { %v1647_v28 = vsub.f32 %v1391_v39, %v1519_v40  ;;  %v1455_v39 = vld [vmem:[#allocation5 + $0x230] sm:$0xff] }
 0x658   :  { %v1648_v45 = vsub.f32 %v1392_v42, %v1520_v44  ;;  %v1296_v46 = vpop.f32.mrb[108].mxu1  ;;  %v1456_v42 = vld [vmem:[#allocation5 + $0x238] sm:$0xff] }
 0x659   :  { %1775 = vst [vmem:[#allocation9 + $0x30] sm:$0xff] %v1647_v28  ;;  %v1527_v48 = vmul.f32 0.001, %v1296_v46  ;;  %v1298_v49 = vpop.f32.mrb[109].mxu1 }
 0x65a   :  { %1776 = vst [vmem:[#allocation9 + $0x38] sm:$0xff] %v1648_v45  ;;  %v1528_v27 = vmul.f32 0.001, %v1298_v49 }
 0x65b   :  { %v1655_v51 = vsub.f32 %v1399_v47, %v1527_v48  ;;  %v1463_v47 = vld [vmem:[#allocation5 + $0x270] sm:$0xff] }
 0x65c   :  { %v1656_v52 = vsub.f32 %v1400_v50, %v1528_v27  ;;  %v1302_v53 = vpop.f32.mrb[110].mxu1  ;;  %v1464_v50 = vld [vmem:[#allocation5 + $0x278] sm:$0xff] }
 0x65d   :  { %1783 = vst [vmem:[#allocation9 + $0x70] sm:$0xff] %v1655_v51  ;;  %v1535_v56 = vmul.f32 0.001, %v1302_v53  ;;  %v1304_v57 = vpop.f32.mrb[111].mxu1 }
 0x65e   :  { %1784 = vst [vmem:[#allocation9 + $0x78] sm:$0xff] %v1656_v52  ;;  %v1536_v59 = vmul.f32 0.001, %v1304_v57 }
 0x65f   :  { %v1663_v60 = vsub.f32 %v1407_v54, %v1535_v56  ;;  %v1471_v54 = vld [vmem:[#allocation5 + $0x2b0] sm:$0xff] }
 0x660   :  { %v1664_v61 = vsub.f32 %v1408_v58, %v1536_v59  ;;  %v1308_v30 = vpop.f32.mrb[112].mxu1  ;;  %v1472_v58 = vld [vmem:[#allocation5 + $0x2b8] sm:$0xff] }
 0x661   :  { %1791 = vst [vmem:[#allocation9 + $0xb0] sm:$0xff] %v1663_v60  ;;  %v1543_v63 = vmul.f32 0.001, %v1308_v30  ;;  %v1310_v11 = vpop.f32.mrb[113].mxu1 }
 0x662   :  { %1792 = vst [vmem:[#allocation9 + $0xb8] sm:$0xff] %v1664_v61  ;;  %v1544_v1 = vmul.f32 0.001, %v1310_v11 }
 0x663   :  { %v1671_v15 = vsub.f32 %v1415_v62, %v1543_v63  ;;  %v1479_v62 = vld [vmem:[#allocation5 + $0x2f0] sm:$0xff] }
 0x664   :  { %v1672_v2 = vsub.f32 %v1416_v0, %v1544_v1  ;;  %v1314_v3 = vpop.f32.mrb[114].mxu1  ;;  %v1480_v0 = vld [vmem:[#allocation5 + $0x2f8] sm:$0xff] }
 0x665   :  { %1799 = vst [vmem:[#allocation9 + $0xf0] sm:$0xff] %v1671_v15  ;;  %v1551_v29 = vmul.f32 0.001, %v1314_v3  ;;  %v1316_v5 = vpop.f32.mrb[115].mxu1 }
 0x666   :  { %1800 = vst [vmem:[#allocation9 + $0xf8] sm:$0xff] %v1672_v2  ;;  %v1552_v7 = vmul.f32 0.001, %v1316_v5 }
 0x667   :  { %v1679_v8 = vsub.f32 %v1423_v4, %v1551_v29  ;;  %v1487_v4 = vld [vmem:[#allocation5 + $0x330] sm:$0xff] }
 0x668   :  { %v1680_v9 = vsub.f32 %v1424_v6, %v1552_v7  ;;  %v1320_v10 = vpop.f32.mrb[116].mxu1  ;;  %v1488_v6 = vld [vmem:[#allocation5 + $0x338] sm:$0xff] }
 0x669   :  { %1807 = vst [vmem:[#allocation9 + $0x130] sm:$0xff] %v1679_v8  ;;  %v1559_v13 = vmul.f32 0.001, %v1320_v10  ;;  %v1322_v14 = vpop.f32.mrb[117].mxu1 }
 0x66a   :  { %1808 = vst [vmem:[#allocation9 + $0x138] sm:$0xff] %v1680_v9  ;;  %v1560_v17 = vmul.f32 0.001, %v1322_v14 }
 0x66b   :  { %v1687_v18 = vsub.f32 %v1431_v12, %v1559_v13  ;;  %v1495_v12 = vld [vmem:[#allocation5 + $0x370] sm:$0xff] }
 0x66c   :  { %v1688_v19 = vsub.f32 %v1432_v16, %v1560_v17  ;;  %v1326_v20 = vpop.f32.mrb[118].mxu1  ;;  %v1496_v16 = vld [vmem:[#allocation5 + $0x378] sm:$0xff] }
 0x66d   :  { %1815 = vst [vmem:[#allocation9 + $0x170] sm:$0xff] %v1687_v18  ;;  %v1567_v55 = vmul.f32 0.001, %v1326_v20  ;;  %v1328_v22 = vpop.f32.mrb[119].mxu1 }
 0x66e   :  { %1816 = vst [vmem:[#allocation9 + $0x178] sm:$0xff] %v1688_v19  ;;  %v1568_v25 = vmul.f32 0.001, %v1328_v22 }
 0x66f   :  { %v1695_v26 = vsub.f32 %v1439_v21, %v1567_v55  ;;  %v1503_v21 = vld [vmem:[#allocation5 + $0x3b0] sm:$0xff] }
 0x670   :  { %v1696_v31 = vsub.f32 %v1440_v23, %v1568_v25  ;;  %v1332_v33 = vpop.f32.mrb[120].mxu1  ;;  %v1504_v23 = vld [vmem:[#allocation5 + $0x3b8] sm:$0xff] }
 0x671   :  { %1823 = vst [vmem:[#allocation9 + $0x1b0] sm:$0xff] %v1695_v26  ;;  %v1575_v32 = vmul.f32 0.001, %v1332_v33  ;;  %v1334_v34 = vpop.f32.mrb[121].mxu1 }
 0x672   :  { %1824 = vst [vmem:[#allocation9 + $0x1b8] sm:$0xff] %v1696_v31  ;;  %v1576_v24 = vmul.f32 0.001, %v1334_v34 }
 0x673   :  { %v1703_v36 = vsub.f32 %v1447_v43, %v1575_v32  ;;  %v1511_v43 = vld [vmem:[#allocation5 + $0x3f0] sm:$0xff] }
 0x674   :  { %v1704_v37 = vsub.f32 %v1448_v35, %v1576_v24  ;;  %v1338_v38 = vpop.f32.mrb[122].mxu1  ;;  %v1512_v35 = vld [vmem:[#allocation5 + $0x3f8] sm:$0xff] }
 0x675   :  { %1831 = vst [vmem:[#allocation9 + $0x1f0] sm:$0xff] %v1703_v36  ;;  %v1583_v40 = vmul.f32 0.001, %v1338_v38  ;;  %v1340_v41 = vpop.f32.mrb[123].mxu1 }
 0x676   :  { %1832 = vst [vmem:[#allocation9 + $0x1f8] sm:$0xff] %v1704_v37  ;;  %v1584_v44 = vmul.f32 0.001, %v1340_v41 }
 0x677   :  { %v1711_v28 = vsub.f32 %v1455_v39, %v1583_v40 }
 0x678   :  { %v1712_v45 = vsub.f32 %v1456_v42, %v1584_v44  ;;  %v1344_v46 = vpop.f32.mrb[124].mxu1 }
 0x679   :  { %1839 = vst [vmem:[#allocation9 + $0x230] sm:$0xff] %v1711_v28  ;;  %v1591_v48 = vmul.f32 0.001, %v1344_v46  ;;  %v1346_v49 = vpop.f32.mrb[125].mxu1 }
 0x67a   :  { %1840 = vst [vmem:[#allocation9 + $0x238] sm:$0xff] %v1712_v45  ;;  %v1592_v27 = vmul.f32 0.001, %v1346_v49 }
 0x67b   :  { %v1719_v51 = vsub.f32 %v1463_v47, %v1591_v48 }
 0x67c   :  { %v1720_v52 = vsub.f32 %v1464_v50, %v1592_v27  ;;  %v1350_v53 = vpop.f32.mrb[126].mxu1 }
 0x67d   :  { %1847 = vst [vmem:[#allocation9 + $0x270] sm:$0xff] %v1719_v51  ;;  %v1599_v56 = vmul.f32 0.001, %v1350_v53  ;;  %v1352_v57 = vpop.f32.mrb[127].mxu1 }
 0x67e   :  { %1848 = vst [vmem:[#allocation9 + $0x278] sm:$0xff] %v1720_v52  ;;  %v1600_v59 = vmul.f32 0.001, %v1352_v57 }
 0x67f   :  { %v1727_v60 = vsub.f32 %v1471_v54, %v1599_v56 }
 0x680   :  { %v1728_v61 = vsub.f32 %v1472_v58, %v1600_v59  ;;  %v1356_v30 = vpop.f32.mrb[128].mxu1 }
 0x681   :  { %1855 = vst [vmem:[#allocation9 + $0x2b0] sm:$0xff] %v1727_v60  ;;  %v1607_v63 = vmul.f32 0.001, %v1356_v30  ;;  %v1358_v11 = vpop.f32.mrb[129].mxu1 }
 0x682   :  { %1856 = vst [vmem:[#allocation9 + $0x2b8] sm:$0xff] %v1728_v61  ;;  %v1608_v1 = vmul.f32 0.001, %v1358_v11 }
 0x683   :  { %v1735_v15 = vsub.f32 %v1479_v62, %v1607_v63 }
 0x684   :  { %v1736_v2 = vsub.f32 %v1480_v0, %v1608_v1  ;;  %v1362_v3 = vpop.f32.mrb[130].mxu1 }
 0x685   :  { %1863 = vst [vmem:[#allocation9 + $0x2f0] sm:$0xff] %v1735_v15  ;;  %v1615_v29 = vmul.f32 0.001, %v1362_v3  ;;  %v1364_v5 = vpop.f32.mrb[131].mxu1 }
 0x686   :  { %1864 = vst [vmem:[#allocation9 + $0x2f8] sm:$0xff] %v1736_v2  ;;  %v1616_v7 = vmul.f32 0.001, %v1364_v5 }
 0x687   :  { %v1743_v8 = vsub.f32 %v1487_v4, %v1615_v29 }
 0x688   :  { %v1744_v9 = vsub.f32 %v1488_v6, %v1616_v7  ;;  %v1368_v10 = vpop.f32.mrb[132].mxu1 }
 0x689   :  { %1871 = vst [vmem:[#allocation9 + $0x330] sm:$0xff] %v1743_v8  ;;  %v1623_v13 = vmul.f32 0.001, %v1368_v10  ;;  %v1370_v14 = vpop.f32.mrb[133].mxu1 }
 0x68a   :  { %1872 = vst [vmem:[#allocation9 + $0x338] sm:$0xff] %v1744_v9  ;;  %v1624_v17 = vmul.f32 0.001, %v1370_v14 }
 0x68b   :  { %v1751_v18 = vsub.f32 %v1495_v12, %v1623_v13 }
 0x68c   :  { %v1752_v19 = vsub.f32 %v1496_v16, %v1624_v17  ;;  %v1374_v20 = vpop.f32.mrb[134].mxu1 }
 0x68d   :  { %1879 = vst [vmem:[#allocation9 + $0x370] sm:$0xff] %v1751_v18  ;;  %v1631_v55 = vmul.f32 0.001, %v1374_v20  ;;  %v1376_v22 = vpop.f32.mrb[135].mxu1 }
 0x68e   :  { %1880 = vst [vmem:[#allocation9 + $0x378] sm:$0xff] %v1752_v19  ;;  %v1632_v25 = vmul.f32 0.001, %v1376_v22 }
 0x68f   :  { %v1759_v26 = vsub.f32 %v1503_v21, %v1631_v55 }
 0x690   :  { %v1760_v31 = vsub.f32 %v1504_v23, %v1632_v25  ;;  %v1380_v33 = vpop.f32.mrb[136].mxu1 }
 0x691   :  { %1887 = vst [vmem:[#allocation9 + $0x3b0] sm:$0xff] %v1759_v26  ;;  %v1639_v32 = vmul.f32 0.001, %v1380_v33  ;;  %v1382_v34 = vpop.f32.mrb[137].mxu1 }
 0x692   :  { %1888 = vst [vmem:[#allocation9 + $0x3b8] sm:$0xff] %v1760_v31  ;;  %v1640_v24 = vmul.f32 0.001, %v1382_v34 }
 0x693   :  { %v1767_v36 = vsub.f32 %v1511_v43, %v1639_v32 }
 0x694   :  { %v1768_v37 = vsub.f32 %v1512_v35, %v1640_v24 }
 0x695   :  { %1895 = vst [vmem:[#allocation9 + $0x3f0] sm:$0xff] %v1767_v36 }
 0x696   :  { %1896 = vst [vmem:[#allocation9 + $0x3f8] sm:$0xff] %v1768_v37 }
 0x697   :  { %2214 = shalt.err (!%p2211_p8)
}
 0x698   :  { %s2215_s23 = scalar_lea.hbm %s2691_s4, 16384 }
 0x699   :  { %p2216_p9 = scmp.ne.s32.totalorder %s2691_s4, %s2215_s23  ;;  %p2219_p10 = scmp.lt.u32.totalorder %s2215_s23, %s2691_s4 }
 0x69b   :  { %p2221_p11 = pnand %p2219_p10, %p2216_p9 }
 0x69d   :  { %2224 = shalt.err (!%p2221_p11)
}
 0x69e   :  { %1918 = dma.vmem_to_hbm [thread:$0]  %s1913_s1, 16384, %s2691_s4, [#allocation10], %s2256_s28, %s2256_s28, %s2257_s29  }
 0x69f   :  { %s2225_s6 = scalar_lea.vmem %s1926_s19, 16  ;;  %s2229_s2 = scalar_lea.vmem %s1926_s19, 32 }
 0x6a0   :  { %p2226_p12 = scmp.ne.s32.totalorder %s1926_s19, %s2225_s6  ;;  %p2230_p13 = scmp.lt.s32.totalorder %s1926_s19, %s1926_s19 }
 0x6a1   :  { %p2231_p0 = scmp.lt.s32.totalorder %s2229_s2, %s2225_s6 }
 0x6a3   :  { %p2232_p1 = por %p2231_p0, %p2230_p13 }
 0x6a5   :  { %p2233_p2 = pnand %p2232_p1, %p2226_p12 }
 0x6a7   :  { %2236 = shalt.err (!%p2233_p2)
}
 0x6a8   :  { %s2237_s9 = scalar_lea.hbm %s2692_s5, 16 }
 0x6a9   :  { %p2238_p3 = scmp.ne.s32.totalorder %s2692_s5, %s2237_s9  ;;  %p2241_p4 = scmp.lt.u32.totalorder %s2237_s9, %s2692_s5 }
 0x6ab   :  { %p2243_p5 = pnand %p2241_p4, %p2238_p3 }
 0x6ad   :  { %2246 = shalt.err (!%p2243_p5)
}
 0x6ae   :  { %1928 = dma.vmem_to_hbm [thread:$0]  %s1926_s19, 16, %s2692_s5, [#allocation10]  }
 0x6af   :  { %2251 = dma.done.wait [#allocation4], 128  }
 0x6b0   :  { %2252 = vsyncadd [#allocation4], 4294967168 }
 0x6b1   :  { %2253 = dma.done.wait [#allocation10], 16400  }
 0x6b2   :  { %2254 = vsyncadd [#allocation10], 4294950896 }
 0x6b3   :  { %1938 = vsyncpa [#allocation3], 1 }
 0x6b4   :  { %1939 = vsyncpa [#allocation6], 1 }
 0x6b5   :  { %1940 = vsyncpa [#allocation4], 1 }
 0x6b6   :  { %1941 = vsyncpa [#allocation10], 1 }

</bundles_post_ra>
